<compile_context>
chip_gen: v7x
topology: tpu7x:2x2x1
jax: 0.10.0
libtpu: 0.0.40
codegen_flags: <defaults>
</compile_context>

<pallas_src>
import math
import numpy as np

import jax
import jax.numpy as jnp
from jax.experimental import pallas as pl
from jax.experimental.pallas import tpu as pltpu

# ----- tiny synthetic T5-v1.1 encoder config (small shapes) -----
MAX_LENGTH   = 8      # max_length (77 in the original module)
VOCAB        = 64
D_MODEL      = 32
N_HEADS      = 4
D_KV         = 8      # N_HEADS * D_KV == D_MODEL
D_FF         = 64
N_LAYERS     = 2
NUM_BUCKETS  = 8
MAX_DISTANCE = 16
EPS          = 1e-6
NEG_INF      = -1e9

HDK = N_HEADS * D_KV


# =====================  Pallas kernel  =====================

def _gelu_new(x):
    # HF "gelu_new" (tanh approximation), used by T5 v1.1 gated-gelu FFN.
    return 0.5 * x * (1.0 + jnp.tanh(
        math.sqrt(2.0 / math.pi) * (x + 0.044715 * x * x * x)))


def _encoder_kernel(x_ref, bias_ref, mask_ref,
                    ln1_ref, wqkv_ref, wo_ref,
                    ln2_ref, wi0_ref, wi1_ref, wo_ff_ref,
                    lnf_ref, o_ref):
    """One batch element per grid step: full T5 encoder stack, residual in VMEM."""
    S, D = x_ref.shape

    x = x_ref[...].astype(jnp.float32)          # (S, D) residual stream (fp32)
    bias = bias_ref[...]                        # (H, S, S) fp32, shared by all layers
    mk = mask_ref[...]                          # (1, 1, S) fp32 additive key-pad mask

    def rms(h, w_row):  # h: (S, D), w_row: (1, D) — T5 LayerNorm (no mean, no bias)
        var = jnp.mean(h * h, axis=-1, keepdims=True)
        return h * jax.lax.rsqrt(var + EPS) * w_row

    for l in range(N_LAYERS):  # static unroll; weights read per layer from Refs
        # ---- self-attention: norm -> fused QKV -> multi-head attn -> out-proj -> +res ----
        ln1 = ln1_ref[l:l + 1, :]               # (1, D) fp32
        wqkv_l = wqkv_ref[l]                    # (D, 3*HDK) bf16
        wo_l = wo_ref[l]                        # (HDK, D)   bf16

        h = rms(x, ln1)
        qkv = jnp.dot(h.astype(jnp.bfloat16), wqkv_l,
                      preferred_element_type=jnp.float32)        # (S, 3*HDK) fp32

        # split q/k/v (lane-aligned at real HDK=768; tiny here) and go head-major
        q = pltpu.einshape("shd->hsd", qkv[:, :HDK].reshape(S, N_HEADS, D_KV))
        k = pltpu.einshape("shd->hsd", qkv[:, HDK:2 * HDK].reshape(S, N_HEADS, D_KV))
        v = pltpu.einshape("shd->hsd", qkv[:, 2 * HDK:].reshape(S, N_HEADS, D_KV))

        # T5 attention: no 1/sqrt(d_kv) scaling (absorbed into init).
        s = jnp.einsum('hqd,hkd->hqk', q, k,
                       preferred_element_type=jnp.float32)       # (H, S, S)
        s = s + bias + mk                                        # rel-pos bias + pad mask
        mmax = jnp.max(s, axis=-1, keepdims=True)
        p = jnp.exp(s - mmax)
        den = jnp.sum(p, axis=-1, keepdims=True)
        p = p * pl.reciprocal(den, approx=True)                  # EUP reciprocal
        o = jnp.einsum('hqk,hkd->hqd', p, v,
                       preferred_element_type=jnp.float32)       # (H, S, dk)

        o = pltpu.einshape("hsd->shd", o).reshape(S, HDK)        # merge heads -> (S, HDK)
        x = x + jnp.dot(o.astype(jnp.bfloat16), wo_l,            # single out-proj matmul
                        preferred_element_type=jnp.float32)

        # ---- gated-GELU FFN: norm -> wi0/wi1 -> gate -> wo -> +residual ----
        ln2 = ln2_ref[l:l + 1, :]               # (1, D) fp32
        wi0_l = wi0_ref[l]                      # (D, F) bf16
        wi1_l = wi1_ref[l]                      # (D, F) bf16
        wff_l = wo_ff_ref[l]                    # (F, D) bf16

        h = rms(x, ln2)
        hb = h.astype(jnp.bfloat16)
        g = _gelu_new(jnp.dot(hb, wi0_l, preferred_element_type=jnp.float32))
        u = jnp.dot(hb, wi1_l, preferred_element_type=jnp.float32)
        hg = g * u                                                # (S, F) fp32
        x = x + jnp.dot(hg.astype(jnp.bfloat16), wff_l,
                        preferred_element_type=jnp.float32)

    x = rms(x, lnf_ref[...])                                      # final RMSNorm
    o_ref[...] = x.astype(o_ref.dtype)                            # lane-dense (S, D) store


def t5_encoder_pallas(x_flat, pos_bias, mask_add, params):
    """x_flat: (B*S, D) fp32; pos_bias: (H,S,S) fp32; mask_add: (B,1,S) fp32."""
    M, D = x_flat.shape
    B = mask_add.shape[0]
    S = M // B
    H = pos_bias.shape[0]
    L = params["ln1"].shape[0]
    F = params["wi0"].shape[-1]

    full = lambda shape: pl.BlockSpec(shape, lambda b: (0,) * len(shape))

    return pl.pallas_call(
        _encoder_kernel,
        out_shape=jax.ShapeDtypeStruct((M, D), jnp.float32),
        grid=(B,),
        in_specs=[
            pl.BlockSpec((S, D), lambda b: (b, 0)),          # x rows for this batch elem
            full((H, S, S)),                                 # shared rel-pos bias
            pl.BlockSpec((1, 1, S), lambda b: (b, 0, 0)),    # this elem's key-pad mask
            full((L, D)),                                    # ln1
            full((L, D, 3 * HDK)),                           # wqkv (bf16)
            full((L, HDK, D)),                               # wo   (bf16)
            full((L, D)),                                    # ln2
            full((L, D, F)),                                 # wi0  (bf16)
            full((L, D, F)),                                 # wi1  (bf16)
            full((L, F, D)),                                 # wo_ff(bf16)
            full((1, D)),                                    # lnf
        ],
        out_specs=pl.BlockSpec((S, D), lambda b: (b, 0)),
        compiler_params=pltpu.CompilerParams(
            dimension_semantics=("parallel",)),              # v7x: 2 TCs split the batch
    )(x_flat, pos_bias, mask_add,
      params["ln1"], params["wqkv"], params["wo"],
      params["ln2"], params["wi0"], params["wi1"], params["wo_ff"],
      params["lnf"])


# =====================  plain-JAX glue  =====================

def _relative_position_bucket(relative_position, num_buckets, max_distance):
    # bidirectional (encoder)
    num_buckets = num_buckets // 2
    relative_buckets = (relative_position > 0).astype(jnp.int32) * num_buckets
    rp = jnp.abs(relative_position)
    max_exact = num_buckets // 2
    is_small = rp < max_exact
    rp_large = max_exact + (
        jnp.log(jnp.maximum(rp, 1).astype(jnp.float32) / max_exact)
        / math.log(max_distance / max_exact)
        * (num_buckets - max_exact)
    ).astype(jnp.int32)
    rp_large = jnp.minimum(rp_large, num_buckets - 1)
    return relative_buckets + jnp.where(is_small, rp, rp_large)


def compute_position_bias(rel_table, seq_len):
    ctx = jnp.arange(seq_len)[:, None]
    mem = jnp.arange(seq_len)[None, :]
    buckets = _relative_position_bucket(mem - ctx, NUM_BUCKETS, MAX_DISTANCE)  # (S,S)
    bias = jnp.take(rel_table, buckets, axis=0)                 # (S, S, H)
    return jnp.transpose(bias, (2, 0, 1)).astype(jnp.float32)   # (H, S, S)


def fake_tokenize(texts, max_length, vocab):
    # deterministic toy tokenizer (see TODO at top of file)
    ids = np.zeros((len(texts), max_length), dtype=np.int32)
    mask = np.zeros((len(texts), max_length), dtype=np.int32)
    for i, t in enumerate(texts):
        toks = [(ord(c) % (vocab - 2)) + 2 for c in t][: max_length - 1] + [1]  # eos=1, pad=0
        ids[i, : len(toks)] = toks
        mask[i, : len(toks)] = 1
    return jnp.asarray(ids), jnp.asarray(mask)


def init_params(key):
    def norm(k, shape, scale=0.05):
        return scale * jax.random.normal(k, shape, dtype=jnp.float32)

    keys = jax.random.split(key, 2 + 7 * N_LAYERS)
    wqkv_l, wo_l, wi0_l, wi1_l, wo_ff_l = [], [], [], [], []
    ki = 2
    for _ in range(N_LAYERS):
        wq = norm(keys[ki + 0], (D_MODEL, HDK))
        wk = norm(keys[ki + 1], (D_MODEL, HDK))
        wv = norm(keys[ki + 2], (D_MODEL, HDK))
        wqkv_l.append(jnp.concatenate([wq, wk, wv], axis=1))      # (D, 3*HDK) fused QKV
        wo_l.append(norm(keys[ki + 3], (HDK, D_MODEL)))
        wi0_l.append(norm(keys[ki + 4], (D_MODEL, D_FF)))
        wi1_l.append(norm(keys[ki + 5], (D_MODEL, D_FF)))
        wo_ff_l.append(norm(keys[ki + 6], (D_FF, D_MODEL)))
        ki += 7

    bf16 = jnp.bfloat16
    return {
        "embed":    norm(keys[0], (VOCAB, D_MODEL), 1.0),
        "rel_bias": norm(keys[1], (NUM_BUCKETS, N_HEADS), 0.5),
        "ln1":   jnp.ones((N_LAYERS, D_MODEL), jnp.float32),
        "ln2":   jnp.ones((N_LAYERS, D_MODEL), jnp.float32),
        "lnf":   jnp.ones((1, D_MODEL), jnp.float32),
        # projection weights in bf16 (review item): half DMA/VMEM, native MXU rate
        "wqkv":  jnp.stack(wqkv_l).astype(bf16),
        "wo":    jnp.stack(wo_l).astype(bf16),
        "wi0":   jnp.stack(wi0_l).astype(bf16),
        "wi1":   jnp.stack(wi1_l).astype(bf16),
        "wo_ff": jnp.stack(wo_ff_l).astype(bf16),
    }


def t5_encoder_apply(params, input_ids, attn_mask):
    """Returns (attn_mask.bool(), last_hidden_state) like the torch module."""
    B, S = input_ids.shape

    x = jnp.take(params["embed"], input_ids, axis=0)                       # (B, S, D) gather
    pos_bias = compute_position_bias(params["rel_bias"], S)                # (H, S, S)
    mask_add = ((1.0 - attn_mask.astype(jnp.float32)) * NEG_INF
                ).reshape(B, 1, S)                                         # (B, 1, S)

    # lane-dense (M, D) slab in / out; (B, S, D) reshape stays in the wrapper
    x_flat = x.reshape(B * S, D_MODEL).astype(jnp.float32)
    out_flat = t5_encoder_pallas(x_flat, pos_bias, mask_add, params)       # (M, D)
    encoded = out_flat.reshape(B, S, D_MODEL)
    return attn_mask.astype(bool), encoded


# =====================  main  =====================

if __name__ == "__main__":
    texts = ["a photo of a cat", "hello pallas tpu"]
    input_ids, attention_mask = fake_tokenize(texts, MAX_LENGTH, VOCAB)

    params = init_params(jax.random.PRNGKey(0))

    apply_fn = jax.jit(t5_encoder_apply)
    attn_mask_out, encoded_text = apply_fn(params, input_ids, attention_mask)
    jax.block_until_ready(encoded_text)
    jax.block_until_ready(attn_mask_out)

    assert attn_mask_out.shape == (2, MAX_LENGTH) and attn_mask_out.dtype == jnp.bool_
    assert encoded_text.shape == (2, MAX_LENGTH, D_MODEL)
    assert bool(jnp.all(jnp.isfinite(encoded_text)))

    print("KERNEL_OK")
</pallas_src>

<mosaic_0001>
module attributes {stable_mosaic.version = 11 : i64} {
  func.func @_encoder_kernel(%arg0: i32, %arg1: memref<8x32xf32, #tpu.memory_space<vmem>>, %arg2: memref<4x8x8xf32, #tpu.memory_space<vmem>>, %arg3: memref<1x1x8xf32, #tpu.memory_space<vmem>>, %arg4: memref<2x32xf32, #tpu.memory_space<vmem>>, %arg5: memref<2x32x96xbf16, #tpu.memory_space<vmem>>, %arg6: memref<2x32x32xbf16, #tpu.memory_space<vmem>>, %arg7: memref<2x32xf32, #tpu.memory_space<vmem>>, %arg8: memref<2x32x64xbf16, #tpu.memory_space<vmem>>, %arg9: memref<2x32x64xbf16, #tpu.memory_space<vmem>>, %arg10: memref<2x64x32xbf16, #tpu.memory_space<vmem>>, %arg11: memref<1x32xf32, #tpu.memory_space<vmem>>, %arg12: memref<8x32xf32, #tpu.memory_space<vmem>>) attributes {dimension_semantics = [#tpu.dimension_semantics<parallel>], iteration_bounds = array<i64: 2>, scalar_prefetch = 0 : i64, scratch_operands = 0 : i64, tpu.core_type = #tpu.core_type<tc>, window_params = [{transform_indices = @transform_0, window_bounds = array<i64: 8, 32>}, {pipeline_mode = #tpu.pipeline_mode<synchronous>, transform_indices = @transform_1, window_bounds = array<i64: 4, 8, 8>}, {transform_indices = @transform_2, window_bounds = array<i64: 1, 1, 8>}, {pipeline_mode = #tpu.pipeline_mode<synchronous>, transform_indices = @transform_3, window_bounds = array<i64: 2, 32>}, {pipeline_mode = #tpu.pipeline_mode<synchronous>, transform_indices = @transform_4, window_bounds = array<i64: 2, 32, 96>}, {pipeline_mode = #tpu.pipeline_mode<synchronous>, transform_indices = @transform_5, window_bounds = array<i64: 2, 32, 32>}, {pipeline_mode = #tpu.pipeline_mode<synchronous>, transform_indices = @transform_6, window_bounds = array<i64: 2, 32>}, {pipeline_mode = #tpu.pipeline_mode<synchronous>, transform_indices = @transform_7, window_bounds = array<i64: 2, 32, 64>}, {pipeline_mode = #tpu.pipeline_mode<synchronous>, transform_indices = @transform_8, window_bounds = array<i64: 2, 32, 64>}, {pipeline_mode = #tpu.pipeline_mode<synchronous>, transform_indices = @transform_9, window_bounds = array<i64: 2, 64, 32>}, {pipeline_mode = #tpu.pipeline_mode<synchronous>, transform_indices = @transform_10, window_bounds = array<i64: 1, 32>}, {transform_indices = @transform_11, window_bounds = array<i64: 8, 32>}]} {
    %c0 = arith.constant 0 : index
    %c0_0 = arith.constant 0 : index
    %0 = vector.load %arg1[%c0, %c0_0] : memref<8x32xf32, #tpu.memory_space<vmem>>, vector<8x32xf32>
    %c0_1 = arith.constant 0 : index
    %c0_2 = arith.constant 0 : index
    %c0_3 = arith.constant 0 : index
    %1 = vector.load %arg2[%c0_1, %c0_2, %c0_3] : memref<4x8x8xf32, #tpu.memory_space<vmem>>, vector<4x8x8xf32>
    %c0_4 = arith.constant 0 : index
    %c0_5 = arith.constant 0 : index
    %c0_6 = arith.constant 0 : index
    %2 = vector.load %arg3[%c0_4, %c0_5, %c0_6] : memref<1x1x8xf32, #tpu.memory_space<vmem>>, vector<1x1x8xf32>
    %c0_7 = arith.constant 0 : index
    %c0_8 = arith.constant 0 : index
    %3 = vector.load %arg4[%c0_7, %c0_8] : memref<2x32xf32, #tpu.memory_space<vmem>>, vector<1x32xf32>
    %c0_9 = arith.constant 0 : index
    %c0_10 = arith.constant 0 : index
    %c0_11 = arith.constant 0 : index
    %4 = vector.load %arg5[%c0_9, %c0_10, %c0_11] : memref<2x32x96xbf16, #tpu.memory_space<vmem>>, vector<1x32x96xbf16>
    %5 = vector.shape_cast %4 : vector<1x32x96xbf16> to vector<32x96xbf16>
    %c0_12 = arith.constant 0 : index
    %c0_13 = arith.constant 0 : index
    %c0_14 = arith.constant 0 : index
    %6 = vector.load %arg6[%c0_12, %c0_13, %c0_14] : memref<2x32x32xbf16, #tpu.memory_space<vmem>>, vector<1x32x32xbf16>
    %7 = vector.shape_cast %6 : vector<1x32x32xbf16> to vector<32x32xbf16>
    %8 = arith.mulf %0, %0 : vector<8x32xf32>
    %cst = arith.constant dense<0.000000e+00> : vector<8xf32>
    %9 = vector.multi_reduction <add>, %8, %cst [1] : vector<8x32xf32> to vector<8xf32>
    %10 = vector.shape_cast %9 : vector<8xf32> to vector<8x1xf32>
    %cst_15 = arith.constant 3.200000e+01 : f32
    %11 = vector.broadcast %cst_15 : f32 to vector<8x1xf32>
    %12 = arith.divf %10, %11 : vector<8x1xf32>
    %cst_16 = arith.constant 9.99999997E-7 : f32
    %13 = vector.broadcast %cst_16 : f32 to vector<8x1xf32>
    %14 = arith.addf %12, %13 : vector<8x1xf32>
    %15 = math.rsqrt %14 : vector<8x1xf32>
    %16 = vector.broadcast %15 : vector<8x1xf32> to vector<8x32xf32>
    %17 = arith.mulf %0, %16 : vector<8x32xf32>
    %18 = vector.broadcast %3 : vector<1x32xf32> to vector<8x32xf32>
    %19 = arith.mulf %17, %18 : vector<8x32xf32>
    %20 = arith.truncf %19 : vector<8x32xf32> to vector<8x32xbf16>
    %cst_17 = arith.constant dense<0.000000e+00> : vector<8x96xf32>
    %21 = tpu.matmul %20, %5, %cst_17 {dimension_numbers = #tpu.dot_dimension_numbers<[1], [0], [0], [1], [0, 0, 1, 1], [], []>} : vector<8x32xbf16>, vector<32x96xbf16>, vector<8x96xf32> -> vector<8x96xf32>
    %22 = vector.extract_strided_slice %21 {offsets = [0, 0], sizes = [8, 32], strides = [1, 1]} : vector<8x96xf32> to vector<8x32xf32>
    %23 = vector.shape_cast %22 : vector<8x32xf32> to vector<8x4x8xf32>
    %24 = tpu.transpose %23, [1, 0, 2] : vector<8x4x8xf32> -> vector<4x8x8xf32>
    %25 = vector.extract_strided_slice %21 {offsets = [0, 32], sizes = [8, 32], strides = [1, 1]} : vector<8x96xf32> to vector<8x32xf32>
    %26 = vector.shape_cast %25 : vector<8x32xf32> to vector<8x4x8xf32>
    %27 = tpu.transpose %26, [1, 0, 2] : vector<8x4x8xf32> -> vector<4x8x8xf32>
    %28 = vector.extract_strided_slice %21 {offsets = [0, 64], sizes = [8, 32], strides = [1, 1]} : vector<8x96xf32> to vector<8x32xf32>
    %29 = vector.shape_cast %28 : vector<8x32xf32> to vector<8x4x8xf32>
    %30 = tpu.transpose %29, [1, 0, 2] : vector<8x4x8xf32> -> vector<4x8x8xf32>
    "tpu.trace_start"() <{level = 10 : i32, message = "hqd,hkd->hqk"}> : () -> ()
    %cst_18 = arith.constant dense<0.000000e+00> : vector<4x8x8xf32>
    %31 = tpu.matmul %24, %27, %cst_18 {dimension_numbers = #tpu.dot_dimension_numbers<[2], [2], [1], [1], [0, 0, 0, 1, 1, 1], [0], [0]>} : vector<4x8x8xf32>, vector<4x8x8xf32>, vector<4x8x8xf32> -> vector<4x8x8xf32>
    "tpu.trace_stop"() : () -> ()
    %32 = arith.addf %31, %1 : vector<4x8x8xf32>
    %33 = vector.broadcast %2 : vector<1x1x8xf32> to vector<4x8x8xf32>
    %34 = arith.addf %32, %33 : vector<4x8x8xf32>
    %cst_19 = arith.constant dense<0xFF800000> : vector<4x8xf32>
    %35 = vector.multi_reduction <maximumf>, %34, %cst_19 [2] : vector<4x8x8xf32> to vector<4x8xf32>
    %36 = vector.shape_cast %35 : vector<4x8xf32> to vector<4x8x1xf32>
    %37 = vector.broadcast %36 : vector<4x8x1xf32> to vector<4x8x8xf32>
    %38 = arith.subf %34, %37 : vector<4x8x8xf32>
    %39 = math.exp %38 : vector<4x8x8xf32>
    %cst_20 = arith.constant dense<0.000000e+00> : vector<4x8xf32>
    %40 = vector.multi_reduction <add>, %39, %cst_20 [2] : vector<4x8x8xf32> to vector<4x8xf32>
    %41 = vector.shape_cast %40 : vector<4x8xf32> to vector<4x8x1xf32>
    %42 = tpu.reciprocal %41 {approx = true} : vector<4x8x1xf32> -> vector<4x8x1xf32>
    %43 = vector.broadcast %42 : vector<4x8x1xf32> to vector<4x8x8xf32>
    %44 = arith.mulf %39, %43 : vector<4x8x8xf32>
    "tpu.trace_start"() <{level = 10 : i32, message = "hqk,hkd->hqd"}> : () -> ()
    %cst_21 = arith.constant dense<0.000000e+00> : vector<4x8x8xf32>
    %45 = tpu.matmul %44, %30, %cst_21 {dimension_numbers = #tpu.dot_dimension_numbers<[2], [1], [1], [2], [0, 0, 0, 1, 1, 2], [0], [0]>} : vector<4x8x8xf32>, vector<4x8x8xf32>, vector<4x8x8xf32> -> vector<4x8x8xf32>
    "tpu.trace_stop"() : () -> ()
    %46 = tpu.transpose %45, [1, 0, 2] : vector<4x8x8xf32> -> vector<8x4x8xf32>
    %47 = vector.shape_cast %46 : vector<8x4x8xf32> to vector<8x32xf32>
    %48 = arith.truncf %47 : vector<8x32xf32> to vector<8x32xbf16>
    %cst_22 = arith.constant dense<0.000000e+00> : vector<8x32xf32>
    %49 = tpu.matmul %48, %7, %cst_22 {dimension_numbers = #tpu.dot_dimension_numbers<[1], [0], [0], [1], [0, 0, 1, 1], [], []>} : vector<8x32xbf16>, vector<32x32xbf16>, vector<8x32xf32> -> vector<8x32xf32>
    %50 = arith.addf %0, %49 : vector<8x32xf32>
    %c0_23 = arith.constant 0 : index
    %c0_24 = arith.constant 0 : index
    %51 = vector.load %arg7[%c0_23, %c0_24] : memref<2x32xf32, #tpu.memory_space<vmem>>, vector<1x32xf32>
    %c0_25 = arith.constant 0 : index
    %c0_26 = arith.constant 0 : index
    %c0_27 = arith.constant 0 : index
    %52 = vector.load %arg8[%c0_25, %c0_26, %c0_27] : memref<2x32x64xbf16, #tpu.memory_space<vmem>>, vector<1x32x64xbf16>
    %53 = vector.shape_cast %52 : vector<1x32x64xbf16> to vector<32x64xbf16>
    %c0_28 = arith.constant 0 : index
    %c0_29 = arith.constant 0 : index
    %c0_30 = arith.constant 0 : index
    %54 = vector.load %arg9[%c0_28, %c0_29, %c0_30] : memref<2x32x64xbf16, #tpu.memory_space<vmem>>, vector<1x32x64xbf16>
    %55 = vector.shape_cast %54 : vector<1x32x64xbf16> to vector<32x64xbf16>
    %c0_31 = arith.constant 0 : index
    %c0_32 = arith.constant 0 : index
    %c0_33 = arith.constant 0 : index
    %56 = vector.load %arg10[%c0_31, %c0_32, %c0_33] : memref<2x64x32xbf16, #tpu.memory_space<vmem>>, vector<1x64x32xbf16>
    %57 = vector.shape_cast %56 : vector<1x64x32xbf16> to vector<64x32xbf16>
    %58 = arith.mulf %50, %50 : vector<8x32xf32>
    %cst_34 = arith.constant dense<0.000000e+00> : vector<8xf32>
    %59 = vector.multi_reduction <add>, %58, %cst_34 [1] : vector<8x32xf32> to vector<8xf32>
    %60 = vector.shape_cast %59 : vector<8xf32> to vector<8x1xf32>
    %cst_35 = arith.constant 3.200000e+01 : f32
    %61 = vector.broadcast %cst_35 : f32 to vector<8x1xf32>
    %62 = arith.divf %60, %61 : vector<8x1xf32>
    %cst_36 = arith.constant 9.99999997E-7 : f32
    %63 = vector.broadcast %cst_36 : f32 to vector<8x1xf32>
    %64 = arith.addf %62, %63 : vector<8x1xf32>
    %65 = math.rsqrt %64 : vector<8x1xf32>
    %66 = vector.broadcast %65 : vector<8x1xf32> to vector<8x32xf32>
    %67 = arith.mulf %50, %66 : vector<8x32xf32>
    %68 = vector.broadcast %51 : vector<1x32xf32> to vector<8x32xf32>
    %69 = arith.mulf %67, %68 : vector<8x32xf32>
    %70 = arith.truncf %69 : vector<8x32xf32> to vector<8x32xbf16>
    %cst_37 = arith.constant dense<0.000000e+00> : vector<8x64xf32>
    %71 = tpu.matmul %70, %53, %cst_37 {dimension_numbers = #tpu.dot_dimension_numbers<[1], [0], [0], [1], [0, 0, 1, 1], [], []>} : vector<8x32xbf16>, vector<32x64xbf16>, vector<8x64xf32> -> vector<8x64xf32>
    %cst_38 = arith.constant 5.000000e-01 : f32
    %72 = vector.broadcast %cst_38 : f32 to vector<8x64xf32>
    %73 = arith.mulf %72, %71 : vector<8x64xf32>
    %cst_39 = arith.constant 4.471500e-02 : f32
    %74 = vector.broadcast %cst_39 : f32 to vector<8x64xf32>
    %75 = arith.mulf %74, %71 : vector<8x64xf32>
    %76 = arith.mulf %75, %71 : vector<8x64xf32>
    %77 = arith.mulf %76, %71 : vector<8x64xf32>
    %78 = arith.addf %71, %77 : vector<8x64xf32>
    %cst_40 = arith.constant 0.797884583 : f32
    %79 = vector.broadcast %cst_40 : f32 to vector<8x64xf32>
    %80 = arith.mulf %79, %78 : vector<8x64xf32>
    %81 = math.tanh %80 : vector<8x64xf32>
    %cst_41 = arith.constant 1.000000e+00 : f32
    %82 = vector.broadcast %cst_41 : f32 to vector<8x64xf32>
    %83 = arith.addf %82, %81 : vector<8x64xf32>
    %84 = arith.mulf %73, %83 : vector<8x64xf32>
    %cst_42 = arith.constant dense<0.000000e+00> : vector<8x64xf32>
    %85 = tpu.matmul %70, %55, %cst_42 {dimension_numbers = #tpu.dot_dimension_numbers<[1], [0], [0], [1], [0, 0, 1, 1], [], []>} : vector<8x32xbf16>, vector<32x64xbf16>, vector<8x64xf32> -> vector<8x64xf32>
    %86 = arith.mulf %84, %85 : vector<8x64xf32>
    %87 = arith.truncf %86 : vector<8x64xf32> to vector<8x64xbf16>
    %cst_43 = arith.constant dense<0.000000e+00> : vector<8x32xf32>
    %88 = tpu.matmul %87, %57, %cst_43 {dimension_numbers = #tpu.dot_dimension_numbers<[1], [0], [0], [1], [0, 0, 1, 1], [], []>} : vector<8x64xbf16>, vector<64x32xbf16>, vector<8x32xf32> -> vector<8x32xf32>
    %89 = arith.addf %50, %88 : vector<8x32xf32>
    %c1 = arith.constant 1 : index
    %c0_44 = arith.constant 0 : index
    %90 = vector.load %arg4[%c1, %c0_44] : memref<2x32xf32, #tpu.memory_space<vmem>>, vector<1x32xf32>
    %c1_45 = arith.constant 1 : index
    %c0_46 = arith.constant 0 : index
    %c0_47 = arith.constant 0 : index
    %91 = vector.load %arg5[%c1_45, %c0_46, %c0_47] : memref<2x32x96xbf16, #tpu.memory_space<vmem>>, vector<1x32x96xbf16>
    %92 = vector.shape_cast %91 : vector<1x32x96xbf16> to vector<32x96xbf16>
    %c1_48 = arith.constant 1 : index
    %c0_49 = arith.constant 0 : index
    %c0_50 = arith.constant 0 : index
    %93 = vector.load %arg6[%c1_48, %c0_49, %c0_50] : memref<2x32x32xbf16, #tpu.memory_space<vmem>>, vector<1x32x32xbf16>
    %94 = vector.shape_cast %93 : vector<1x32x32xbf16> to vector<32x32xbf16>
    %95 = arith.mulf %89, %89 : vector<8x32xf32>
    %cst_51 = arith.constant dense<0.000000e+00> : vector<8xf32>
    %96 = vector.multi_reduction <add>, %95, %cst_51 [1] : vector<8x32xf32> to vector<8xf32>
    %97 = vector.shape_cast %96 : vector<8xf32> to vector<8x1xf32>
    %cst_52 = arith.constant 3.200000e+01 : f32
    %98 = vector.broadcast %cst_52 : f32 to vector<8x1xf32>
    %99 = arith.divf %97, %98 : vector<8x1xf32>
    %cst_53 = arith.constant 9.99999997E-7 : f32
    %100 = vector.broadcast %cst_53 : f32 to vector<8x1xf32>
    %101 = arith.addf %99, %100 : vector<8x1xf32>
    %102 = math.rsqrt %101 : vector<8x1xf32>
    %103 = vector.broadcast %102 : vector<8x1xf32> to vector<8x32xf32>
    %104 = arith.mulf %89, %103 : vector<8x32xf32>
    %105 = vector.broadcast %90 : vector<1x32xf32> to vector<8x32xf32>
    %106 = arith.mulf %104, %105 : vector<8x32xf32>
    %107 = arith.truncf %106 : vector<8x32xf32> to vector<8x32xbf16>
    %cst_54 = arith.constant dense<0.000000e+00> : vector<8x96xf32>
    %108 = tpu.matmul %107, %92, %cst_54 {dimension_numbers = #tpu.dot_dimension_numbers<[1], [0], [0], [1], [0, 0, 1, 1], [], []>} : vector<8x32xbf16>, vector<32x96xbf16>, vector<8x96xf32> -> vector<8x96xf32>
    %109 = vector.extract_strided_slice %108 {offsets = [0, 0], sizes = [8, 32], strides = [1, 1]} : vector<8x96xf32> to vector<8x32xf32>
    %110 = vector.shape_cast %109 : vector<8x32xf32> to vector<8x4x8xf32>
    %111 = tpu.transpose %110, [1, 0, 2] : vector<8x4x8xf32> -> vector<4x8x8xf32>
    %112 = vector.extract_strided_slice %108 {offsets = [0, 32], sizes = [8, 32], strides = [1, 1]} : vector<8x96xf32> to vector<8x32xf32>
    %113 = vector.shape_cast %112 : vector<8x32xf32> to vector<8x4x8xf32>
    %114 = tpu.transpose %113, [1, 0, 2] : vector<8x4x8xf32> -> vector<4x8x8xf32>
    %115 = vector.extract_strided_slice %108 {offsets = [0, 64], sizes = [8, 32], strides = [1, 1]} : vector<8x96xf32> to vector<8x32xf32>
    %116 = vector.shape_cast %115 : vector<8x32xf32> to vector<8x4x8xf32>
    %117 = tpu.transpose %116, [1, 0, 2] : vector<8x4x8xf32> -> vector<4x8x8xf32>
    "tpu.trace_start"() <{level = 10 : i32, message = "hqd,hkd->hqk"}> : () -> ()
    %cst_55 = arith.constant dense<0.000000e+00> : vector<4x8x8xf32>
    %118 = tpu.matmul %111, %114, %cst_55 {dimension_numbers = #tpu.dot_dimension_numbers<[2], [2], [1], [1], [0, 0, 0, 1, 1, 1], [0], [0]>} : vector<4x8x8xf32>, vector<4x8x8xf32>, vector<4x8x8xf32> -> vector<4x8x8xf32>
    "tpu.trace_stop"() : () -> ()
    %119 = arith.addf %118, %1 : vector<4x8x8xf32>
    %120 = vector.broadcast %2 : vector<1x1x8xf32> to vector<4x8x8xf32>
    %121 = arith.addf %119, %120 : vector<4x8x8xf32>
    %cst_56 = arith.constant dense<0xFF800000> : vector<4x8xf32>
    %122 = vector.multi_reduction <maximumf>, %121, %cst_56 [2] : vector<4x8x8xf32> to vector<4x8xf32>
    %123 = vector.shape_cast %122 : vector<4x8xf32> to vector<4x8x1xf32>
    %124 = vector.broadcast %123 : vector<4x8x1xf32> to vector<4x8x8xf32>
    %125 = arith.subf %121, %124 : vector<4x8x8xf32>
    %126 = math.exp %125 : vector<4x8x8xf32>
    %cst_57 = arith.constant dense<0.000000e+00> : vector<4x8xf32>
    %127 = vector.multi_reduction <add>, %126, %cst_57 [2] : vector<4x8x8xf32> to vector<4x8xf32>
    %128 = vector.shape_cast %127 : vector<4x8xf32> to vector<4x8x1xf32>
    %129 = tpu.reciprocal %128 {approx = true} : vector<4x8x1xf32> -> vector<4x8x1xf32>
    %130 = vector.broadcast %129 : vector<4x8x1xf32> to vector<4x8x8xf32>
    %131 = arith.mulf %126, %130 : vector<4x8x8xf32>
    "tpu.trace_start"() <{level = 10 : i32, message = "hqk,hkd->hqd"}> : () -> ()
    %cst_58 = arith.constant dense<0.000000e+00> : vector<4x8x8xf32>
    %132 = tpu.matmul %131, %117, %cst_58 {dimension_numbers = #tpu.dot_dimension_numbers<[2], [1], [1], [2], [0, 0, 0, 1, 1, 2], [0], [0]>} : vector<4x8x8xf32>, vector<4x8x8xf32>, vector<4x8x8xf32> -> vector<4x8x8xf32>
    "tpu.trace_stop"() : () -> ()
    %133 = tpu.transpose %132, [1, 0, 2] : vector<4x8x8xf32> -> vector<8x4x8xf32>
    %134 = vector.shape_cast %133 : vector<8x4x8xf32> to vector<8x32xf32>
    %135 = arith.truncf %134 : vector<8x32xf32> to vector<8x32xbf16>
    %cst_59 = arith.constant dense<0.000000e+00> : vector<8x32xf32>
    %136 = tpu.matmul %135, %94, %cst_59 {dimension_numbers = #tpu.dot_dimension_numbers<[1], [0], [0], [1], [0, 0, 1, 1], [], []>} : vector<8x32xbf16>, vector<32x32xbf16>, vector<8x32xf32> -> vector<8x32xf32>
    %137 = arith.addf %89, %136 : vector<8x32xf32>
    %c1_60 = arith.constant 1 : index
    %c0_61 = arith.constant 0 : index
    %138 = vector.load %arg7[%c1_60, %c0_61] : memref<2x32xf32, #tpu.memory_space<vmem>>, vector<1x32xf32>
    %c1_62 = arith.constant 1 : index
    %c0_63 = arith.constant 0 : index
    %c0_64 = arith.constant 0 : index
    %139 = vector.load %arg8[%c1_62, %c0_63, %c0_64] : memref<2x32x64xbf16, #tpu.memory_space<vmem>>, vector<1x32x64xbf16>
    %140 = vector.shape_cast %139 : vector<1x32x64xbf16> to vector<32x64xbf16>
    %c1_65 = arith.constant 1 : index
    %c0_66 = arith.constant 0 : index
    %c0_67 = arith.constant 0 : index
    %141 = vector.load %arg9[%c1_65, %c0_66, %c0_67] : memref<2x32x64xbf16, #tpu.memory_space<vmem>>, vector<1x32x64xbf16>
    %142 = vector.shape_cast %141 : vector<1x32x64xbf16> to vector<32x64xbf16>
    %c1_68 = arith.constant 1 : index
    %c0_69 = arith.constant 0 : index
    %c0_70 = arith.constant 0 : index
    %143 = vector.load %arg10[%c1_68, %c0_69, %c0_70] : memref<2x64x32xbf16, #tpu.memory_space<vmem>>, vector<1x64x32xbf16>
    %144 = vector.shape_cast %143 : vector<1x64x32xbf16> to vector<64x32xbf16>
    %145 = arith.mulf %137, %137 : vector<8x32xf32>
    %cst_71 = arith.constant dense<0.000000e+00> : vector<8xf32>
    %146 = vector.multi_reduction <add>, %145, %cst_71 [1] : vector<8x32xf32> to vector<8xf32>
    %147 = vector.shape_cast %146 : vector<8xf32> to vector<8x1xf32>
    %cst_72 = arith.constant 3.200000e+01 : f32
    %148 = vector.broadcast %cst_72 : f32 to vector<8x1xf32>
    %149 = arith.divf %147, %148 : vector<8x1xf32>
    %cst_73 = arith.constant 9.99999997E-7 : f32
    %150 = vector.broadcast %cst_73 : f32 to vector<8x1xf32>
    %151 = arith.addf %149, %150 : vector<8x1xf32>
    %152 = math.rsqrt %151 : vector<8x1xf32>
    %153 = vector.broadcast %152 : vector<8x1xf32> to vector<8x32xf32>
    %154 = arith.mulf %137, %153 : vector<8x32xf32>
    %155 = vector.broadcast %138 : vector<1x32xf32> to vector<8x32xf32>
    %156 = arith.mulf %154, %155 : vector<8x32xf32>
    %157 = arith.truncf %156 : vector<8x32xf32> to vector<8x32xbf16>
    %cst_74 = arith.constant dense<0.000000e+00> : vector<8x64xf32>
    %158 = tpu.matmul %157, %140, %cst_74 {dimension_numbers = #tpu.dot_dimension_numbers<[1], [0], [0], [1], [0, 0, 1, 1], [], []>} : vector<8x32xbf16>, vector<32x64xbf16>, vector<8x64xf32> -> vector<8x64xf32>
    %cst_75 = arith.constant 5.000000e-01 : f32
    %159 = vector.broadcast %cst_75 : f32 to vector<8x64xf32>
    %160 = arith.mulf %159, %158 : vector<8x64xf32>
    %cst_76 = arith.constant 4.471500e-02 : f32
    %161 = vector.broadcast %cst_76 : f32 to vector<8x64xf32>
    %162 = arith.mulf %161, %158 : vector<8x64xf32>
    %163 = arith.mulf %162, %158 : vector<8x64xf32>
    %164 = arith.mulf %163, %158 : vector<8x64xf32>
    %165 = arith.addf %158, %164 : vector<8x64xf32>
    %cst_77 = arith.constant 0.797884583 : f32
    %166 = vector.broadcast %cst_77 : f32 to vector<8x64xf32>
    %167 = arith.mulf %166, %165 : vector<8x64xf32>
    %168 = math.tanh %167 : vector<8x64xf32>
    %cst_78 = arith.constant 1.000000e+00 : f32
    %169 = vector.broadcast %cst_78 : f32 to vector<8x64xf32>
    %170 = arith.addf %169, %168 : vector<8x64xf32>
    %171 = arith.mulf %160, %170 : vector<8x64xf32>
    %cst_79 = arith.constant dense<0.000000e+00> : vector<8x64xf32>
    %172 = tpu.matmul %157, %142, %cst_79 {dimension_numbers = #tpu.dot_dimension_numbers<[1], [0], [0], [1], [0, 0, 1, 1], [], []>} : vector<8x32xbf16>, vector<32x64xbf16>, vector<8x64xf32> -> vector<8x64xf32>
    %173 = arith.mulf %171, %172 : vector<8x64xf32>
    %174 = arith.truncf %173 : vector<8x64xf32> to vector<8x64xbf16>
    %cst_80 = arith.constant dense<0.000000e+00> : vector<8x32xf32>
    %175 = tpu.matmul %174, %144, %cst_80 {dimension_numbers = #tpu.dot_dimension_numbers<[1], [0], [0], [1], [0, 0, 1, 1], [], []>} : vector<8x64xbf16>, vector<64x32xbf16>, vector<8x32xf32> -> vector<8x32xf32>
    %176 = arith.addf %137, %175 : vector<8x32xf32>
    %c0_81 = arith.constant 0 : index
    %c0_82 = arith.constant 0 : index
    %177 = vector.load %arg11[%c0_81, %c0_82] : memref<1x32xf32, #tpu.memory_space<vmem>>, vector<1x32xf32>
    %178 = arith.mulf %176, %176 : vector<8x32xf32>
    %cst_83 = arith.constant dense<0.000000e+00> : vector<8xf32>
    %179 = vector.multi_reduction <add>, %178, %cst_83 [1] : vector<8x32xf32> to vector<8xf32>
    %180 = vector.shape_cast %179 : vector<8xf32> to vector<8x1xf32>
    %cst_84 = arith.constant 3.200000e+01 : f32
    %181 = vector.broadcast %cst_84 : f32 to vector<8x1xf32>
    %182 = arith.divf %180, %181 : vector<8x1xf32>
    %cst_85 = arith.constant 9.99999997E-7 : f32
    %183 = vector.broadcast %cst_85 : f32 to vector<8x1xf32>
    %184 = arith.addf %182, %183 : vector<8x1xf32>
    %185 = math.rsqrt %184 : vector<8x1xf32>
    %186 = vector.broadcast %185 : vector<8x1xf32> to vector<8x32xf32>
    %187 = arith.mulf %176, %186 : vector<8x32xf32>
    %188 = vector.broadcast %177 : vector<1x32xf32> to vector<8x32xf32>
    %189 = arith.mulf %187, %188 : vector<8x32xf32>
    %c0_86 = arith.constant 0 : index
    %c0_87 = arith.constant 0 : index
    %190 = vector.load %arg12[%c0_86, %c0_87] : memref<8x32xf32, #tpu.memory_space<vmem>>, vector<8x32xf32>
    tpu.vector_store %arg12[%c0_86, %c0_87], %189 {strides = array<i32>} : memref<8x32xf32, #tpu.memory_space<vmem>>, vector<8x32xf32>,
    return
  }
  func.func @transform_0(%arg0: i32) -> (i32, i32) {
    %c0_i32 = arith.constant 0 : i32
    %c0_i32_0 = arith.constant 0 : i32
    return %arg0, %c0_i32 : i32, i32
  }
  func.func @transform_1(%arg0: i32) -> (i32, i32, i32) {
    %c0_i32 = arith.constant 0 : i32
    %c0_i32_0 = arith.constant 0 : i32
    %c0_i32_1 = arith.constant 0 : i32
    %c0_i32_2 = arith.constant 0 : i32
    return %c0_i32, %c0_i32_0, %c0_i32_1 : i32, i32, i32
  }
  func.func @transform_2(%arg0: i32) -> (i32, i32, i32) {
    %c0_i32 = arith.constant 0 : i32
    %c0_i32_0 = arith.constant 0 : i32
    %c0_i32_1 = arith.constant 0 : i32
    return %arg0, %c0_i32, %c0_i32_0 : i32, i32, i32
  }
  func.func @transform_3(%arg0: i32) -> (i32, i32) {
    %c0_i32 = arith.constant 0 : i32
    %c0_i32_0 = arith.constant 0 : i32
    %c0_i32_1 = arith.constant 0 : i32
    return %c0_i32, %c0_i32_0 : i32, i32
  }
  func.func @transform_4(%arg0: i32) -> (i32, i32, i32) {
    %c0_i32 = arith.constant 0 : i32
    %c0_i32_0 = arith.constant 0 : i32
    %c0_i32_1 = arith.constant 0 : i32
    %c0_i32_2 = arith.constant 0 : i32
    return %c0_i32, %c0_i32_0, %c0_i32_1 : i32, i32, i32
  }
  func.func @transform_5(%arg0: i32) -> (i32, i32, i32) {
    %c0_i32 = arith.constant 0 : i32
    %c0_i32_0 = arith.constant 0 : i32
    %c0_i32_1 = arith.constant 0 : i32
    %c0_i32_2 = arith.constant 0 : i32
    return %c0_i32, %c0_i32_0, %c0_i32_1 : i32, i32, i32
  }
  func.func @transform_6(%arg0: i32) -> (i32, i32) {
    %c0_i32 = arith.constant 0 : i32
    %c0_i32_0 = arith.constant 0 : i32
    %c0_i32_1 = arith.constant 0 : i32
    return %c0_i32, %c0_i32_0 : i32, i32
  }
  func.func @transform_7(%arg0: i32) -> (i32, i32, i32) {
    %c0_i32 = arith.constant 0 : i32
    %c0_i32_0 = arith.constant 0 : i32
    %c0_i32_1 = arith.constant 0 : i32
    %c0_i32_2 = arith.constant 0 : i32
    return %c0_i32, %c0_i32_0, %c0_i32_1 : i32, i32, i32
  }
  func.func @transform_8(%arg0: i32) -> (i32, i32, i32) {
    %c0_i32 = arith.constant 0 : i32
    %c0_i32_0 = arith.constant 0 : i32
    %c0_i32_1 = arith.constant 0 : i32
    %c0_i32_2 = arith.constant 0 : i32
    return %c0_i32, %c0_i32_0, %c0_i32_1 : i32, i32, i32
  }
  func.func @transform_9(%arg0: i32) -> (i32, i32, i32) {
    %c0_i32 = arith.constant 0 : i32
    %c0_i32_0 = arith.constant 0 : i32
    %c0_i32_1 = arith.constant 0 : i32
    %c0_i32_2 = arith.constant 0 : i32
    return %c0_i32, %c0_i32_0, %c0_i32_1 : i32, i32, i32
  }
  func.func @transform_10(%arg0: i32) -> (i32, i32) {
    %c0_i32 = arith.constant 0 : i32
    %c0_i32_0 = arith.constant 0 : i32
    %c0_i32_1 = arith.constant 0 : i32
    return %c0_i32, %c0_i32_0 : i32, i32
  }
  func.func @transform_11(%arg0: i32) -> (i32, i32) {
    %c0_i32 = arith.constant 0 : i32
    %c0_i32_0 = arith.constant 0 : i32
    return %arg0, %c0_i32 : i32, i32
  }
}

</mosaic_0001>

<bundles_post_ra>
// kernel: t5_encoder_apply.1
= control target key start
LH: loop header
LB: loop body
LE: loop exit
PB: predicated region body
PF: predicated region fallthrough
CT: control target
= control target key end

     0   :  { %s4955_s0 = inlined_call_operand.vmem [shape: f32[16,32], index: 0, kind: input, shape index: {}]   ;;  %s4956_s1 = inlined_call_operand.vmem [shape: f32[4,8,8], index: 1, kind: input, shape index: {}]   ;;  %s4957_s2 = inlined_call_operand.vmem [shape: f32[2,1,8], index: 2, kind: input, shape index: {}]   ;;  %s4958_s3 = inlined_call_operand.vmem [shape: f32[2,32], index: 3, kind: input, shape index: {}]   ;;  %s4959_s4 = inlined_call_operand.vmem [shape: bf16[2,32,96], index: 4, kind: input, shape index: {}]   ;;  %s4960_s5 = inlined_call_operand.vmem [shape: bf16[2,32,32], index: 5, kind: input, shape index: {}]   ;;  %s4961_s6 = inlined_call_operand.vmem [shape: f32[2,32], index: 6, kind: input, shape index: {}]   ;;  %s4962_s7 = inlined_call_operand.vmem [shape: bf16[2,32,64], index: 7, kind: input, shape index: {}]   ;;  %s4963_s8 = inlined_call_operand.vmem [shape: bf16[2,32,64], index: 8, kind: input, shape index: {}]   ;;  %s4964_s9 = inlined_call_operand.vmem [shape: bf16[2,64,32], index: 9, kind: input, shape index: {}]   ;;  %s4965_s10 = inlined_call_operand.vmem [shape: f32[1,32], index: 10, kind: input, shape index: {}]   ;;  %s4966_s11 = inlined_call_operand.hbm [shape: f32[16,32], index: 11, kind: output, shape index: {}]  }
   0x1   :  { %4975 = sst [smem:[#allocation5_spill]] %s4955_s0 }
   0x2   :  { %16 = vsyncpa [#allocation3], 0 }
   0x3   :  { %18 = vsyncpa [#allocation3 + $0x1], 0  ;;  %s4303_s17 = smov 0   ;;  %s4305_s18 = smov 0  }
   0x4   :  { %s4307_s19 = smov 0   ;;  %s4309_s20 = smov 0  }
   0x5 LB: > { %s4324_s21 = sadd.s32 4294967295, %s4228_s20   ;;  %s3697_s22 = sadd.s32 4294967294, %s4228_s20   ;;  %s4228_s20 = sphi %s4309_s20, %s4988_s20   ;;  %s4224_s19 = sphi %s4307_s19, %s4987_s19   ;;  %s4220_s18 = sphi %s4305_s18, %s4986_s18   ;;  %s4216_s17 = sphi %s4303_s17, %s4985_s17  }
   0x6   : > { %s4328_s23 = sadd.s32 1, %s4228_s20   ;;  %s272_s24 = sadd.s32 1, %s4224_s19 }
   0x7   : > { %s269_s25 = ssub.s32 %s4228_s20, %s4328_s23  ;;  %p282_p0 = scmp.ne.s32.totalorder %s4224_s19, %s4220_s18 }
   0x8   : > { %p270_p1 = scmp.eq.s32.totalorder %s269_s25, 0  ;;  %p283_p2 = scmp.eq.s32.totalorder %s4324_s21, 1 }
   0x9   : > { %p288_p3 = scmp.ne.s32.totalorder %s4220_s18, %s4216_s17  ;;  %p289_p4 = scmp.eq.s32.totalorder %s3697_s22, 1 }
   0xa   : > { %s4339_s26 = scalar_select %p270_p1, %s4224_s19, %s272_s24  }
   0xb   : > { %p4341_p5 = por %p283_p2, %p282_p0  ;;  %p4345_p6 = por %p289_p4, %p288_p3 }
   0xc   : > { %p3700_p7 = scmp.ge.s32.totalorder %s4228_s20, 1  ;;  %p347_p8 = scmp.lt.s32.totalorder %s4228_s20, 3 }
   0xe   : > { %p348_p9 = pnand %p3700_p7, %p347_p8 }
   0xf   : > { %p389_p10 = scmp.lt.s32.totalorder (!%p348_p9), %s4324_s21, 1  ;;  %s4978_s0 = sld [smem:[#allocation5_spill]] (!%p348_p9)  ;;  %vm413_vm0 = vcmask (!%p348_p9), 261120   ;;  %v4096_v3 = vld [vmem:[%s4959_s4] sm:$0xff] (!%p348_p9)   ;;  %v4230_v4 = vmov (!%p348_p9), 0.0   ;;  %vm4231_vm1 = vmmov (!%p348_p9), 0   ;;  %v498_v23 = vlaneseq (!%p348_p9) }
  0x10   : > { %351 = sbr.rel (%p348_p9) target bundleno = 4955 (0x135b), region = 64  ;;  %3877 = vmatprep.subr.bf16.mxu0 (!%p348_p9), %v4230_v4  ;;  %3881 = vmatprep.mubr.msk.bf16.mxu0 (!%p348_p9), %vm4231_vm1, %v4230_v4  ;;  %v4097_v5 = vld [vmem:[%s4959_s4 + $0x8] sm:$0xff] (!%p348_p9)   ;;  %v3703_v10 = vld [vmem:[%s4958_s3] ss:$0 sm:$0xff] (!%p348_p9)  ;;  %s4232_s12 = smov (!%p348_p9), 112   ;;  %vm925_vm2 = vcmask (!%p348_p9), 64512  }
  0x11   : > { %3878 = vmatpush3.bf16.msra.mxu0 (!%p348_p9), %v4096_v3  ;;  %3885 = vmatprep.subr.mxu1 (!%p348_p9), %v4230_v4  ;;  %s4233_s13 = smov (!%p348_p9), 120   ;;  %s4968_s15 = smov (!%p348_p9), 96   ;;  %v4236_v21 = vmov (!%p348_p9), 1983009808   ;;  %v499_v25 = vshrl.u32 (!%p348_p9), %v498_v23, 7  ;;  %vm1725_vm3 = vcmask (!%p348_p9), 130048  }
  0x12   : > { %3879 = vmatprep.subr.bf16.mxu0 (!%p348_p9), %v4230_v4  ;;  %3887 = vmatprep.mubr.msk.f32.mxu1 (!%p348_p9), %vm4231_vm1, %v4230_v4  ;;  %v496_v22 = vunpack.c.l.s4 (!%p348_p9), %v4236_v21  ;;  %v4237_v26 = vmov (!%p348_p9), 1934713408   ;;  %s4973_s22 = smov (!%p348_p9), 64   ;;  %s4972_s16 = smov (!%p348_p9), 16   ;;  %vm1727_vm4 = vcmask (!%p348_p9), 195584   ;;  %vm1959_vm5 = vcmask (!%p348_p9), 523264  }
  0x13   : > { %v528_v27 = vunpack.c.l.s4 (!%p348_p9), %v4237_v26  ;;  %s4982_s25 = smov (!%p348_p9), 16  }
  0x14   : > { %v497_v24 = vunpack.c.0.s8 (!%p348_p9), %v496_v22 }
  0x15   : > { %3880 = vmatpush3.bf16.msra.mxu0 (!%p348_p9), %v4097_v5  ;;  %v529_v34 = vunpack.c.0.s8 (!%p348_p9), %v528_v27 }
  0x16   : > { %3910 = vmatprep.subr.mxu0 (!%p348_p9), %v4230_v4  ;;  %v4411_v31 = vsub.s32 (!%p348_p9), %v497_v24, %v499_v25 }
  0x17   : > { %s4353_s29 = scalar_select %p389_p10, %s4324_s21, 1  ;;  %v4421_v40 = vsub.s32 %v529_v34, %v499_v25 }
  0x19   : > { %s3702_s30 = sshll.u32 %s4353_s29, 3  ;;  %s395_s24 = scalar_lea.vmem %s4957_s2, %s4353_s29 }
  0x1a   : > { %s392_s14 = scalar_lea.vmem %s4978_s0, %s3702_s30  ;;  %s4983_s30 = smov 8  }
  0x1b   : > { %v4359_v0 = vld [vmem:[%s392_s14] sm:$0xff]  ;;  %s4967_s14 = smov 104   ;;  %s4984_s29 = smov 24  }
  0x1c   : > { %v412_v1 = vmul.f32 %v4359_v0, %v4359_v0 }
  0x1e   : > { %v414_v2 = vsel %vm413_vm0, %v412_v1, 0.0 }
  0x1f   : > { %415 = vadd.xlane.f32.xlu0 %v414_v2 }
  0xac   : > { %v416_v6 = vpop.xlane.xlu0 %415 }
  0xad   : > { %v418_v7 = vmul.f32 0.03125, %v416_v6 }
  0xaf   : > { %v419_v8 = vadd.f32 1e-06, %v418_v7 }
  0xb1   : > { %4120 = vrsqrt.f32 %v419_v8 }
  0xbb   : > { %v4121_v9 = vpop.eup %4120 }
  0xbc   : > { %v421_v11 = vmul.f32 %v4121_v9, %v4359_v0 }
  0xbe   : > { %v426_v12 = vmul.f32 %v3703_v10, %v421_v11 }
  0xc0   : > { %v427_v13 = vpack.c.bf16 %v426_v12, %v426_v12 }
  0xc2   : > { %3882 = vmatmul.mubr.msk.bf16.vlgmr.msra.gmra.mrb[0].mxu0 %vm413_vm0, %v427_v13 }
  0xc3   : > { %3912 = vmatprep.mubr.msk.f32.mxu0 %vm4231_vm1, %v4230_v4 }
 0x195   : > { %v4385_v14 = vpop.f32.mrb[0].mxu0 }
 0x196   : > { %487 = vrot.lane.b32.xlu1 %v4385_v14, %s4232_s12  ;;  %484 = vrot.lane.b32.xlu0 %v4385_v14, %s4233_s13  ;;  %v3883_v15 = vpop.f32.mrb[1].mxu0 }
 0x197   : > { %v480_v16 = vpop.f32.mrb[2].mxu0 }
 0x198   : > { %v3884_v17 = vpop.f32.mrb[3].mxu0 }
 0x19a   : > { %490 = vrot.lane.b32.xlu1 %v4385_v14, %s4967_s14  ;;  %s4971_s14 = smov 8  }
 0x19e   : > { %629 = vrot.lane.b32.xlu1 %v4385_v14, %s4968_s15 }
 0x208   : > { %v4395_v18 = vpop.permute.xlu0 %484  ;;  %v4399_v19 = vpop.permute.xlu1 %487 }
 0x209   : > { %631 = vrot.lane.b32.xlu1 %v4395_v18, %s4968_s15  ;;  %v493_v32 = vcombine.low %v4385_v14, %v4399_v19  ;;  %v494_v33 = vcombine.high %v4385_v14, %v4399_v19 }
 0x20b   : > { %v501_v38 = vrot.slane %v493_v32, %v4411_v31  ;;  %v508_v39 = vrot.slane %v494_v33, %v4411_v31 }
 0x20c   : > { %v4403_v20 = vpop.permute.xlu1 %490 }
 0x20d   : > { %633 = vrot.lane.b32.xlu1 %v4399_v19, %s4968_s15  ;;  %v509_v28 = vcombine.low %v4395_v18, %v4403_v20  ;;  %v510_v29 = vcombine.high %v4395_v18, %v4403_v20 }
 0x20f   : > { %v517_v35 = vrot.slane %v509_v28, %v4411_v31  ;;  %v524_v36 = vrot.slane %v510_v29, %v4411_v31 }
 0x210   : > { %v630_v30 = vpop.permute.xlu1 %629 }
 0x211   : > { %635 = vrot.lane.b32.xlu1 %v4403_v20, %s4968_s15  ;;  %v525_v41 = vcombine.low %v501_v38, %v517_v35  ;;  %v526_v42 = vcombine.high %v501_v38, %v517_v35  ;;  %v541_v43 = vcombine.low %v508_v39, %v524_v36  ;;  %v542_v44 = vcombine.high %v508_v39, %v524_v36  ;;  %s4970_s15 = smov 24  }
 0x213   : > { %v533_v48 = vrot.slane %v525_v41, %v4421_v40  ;;  %v540_v49 = vrot.slane %v526_v42, %v4421_v40  ;;  %v549_v50 = vrot.slane %v541_v43, %v4421_v40  ;;  %v556_v51 = vrot.slane %v542_v44, %v4421_v40 }
 0x215   : > { %v561_v59 = vcombine.low %v533_v48, %v540_v49  ;;  %v3707_v60 = vcombine.high %v533_v48, %v540_v49  ;;  %v577_v61 = vcombine.low %v549_v50, %v556_v51  ;;  %v3708_v62 = vcombine.high %v549_v50, %v556_v51  ;;  %v4478_v51 = vld [vmem:[%s4956_s1] sm:$0xff] }
 0x217   : > { %v568_v9 = vrot.slane %v561_v59, %v4411_v31  ;;  %v576_v10 = vrot.slane %v3707_v60, %v4411_v31  ;;  %v584_v11 = vrot.slane %v577_v61, %v4411_v31  ;;  %v592_v12 = vrot.slane %v3708_v62, %v4411_v31  ;;  %v4494_v62 = vld [vmem:[%s4956_s1 + $0x10] sm:$0xff] }
 0x219   : > { %v593_v25 = vcombine.low %v568_v9, %v576_v10  ;;  %v609_v26 = vcombine.low %v584_v11, %v592_v12  ;;  %v610_v38 = vcombine.high %v584_v11, %v592_v12 }
 0x21b   : > { %v601_v32 = vrot.slane %v593_v25, %v4421_v40  ;;  %v617_v33 = vrot.slane %v609_v26, %v4421_v40 }
 0x21d   : > { %v625_v39 = vcombine.low %v601_v32, %v617_v33  ;;  %v626_v44 = vcombine.high %v601_v32, %v617_v33 }
 0x27b   : > { %v632_v37 = vpop.permute.xlu1 %631 }
 0x27f   : > { %v634_v45 = vpop.permute.xlu1 %633 }
 0x280   : > { %v641_v46 = vcombine.low %v630_v30, %v634_v45  ;;  %v642_v47 = vcombine.high %v630_v30, %v634_v45 }
 0x282   : > { %v649_v55 = vrot.slane %v641_v46, %v4411_v31  ;;  %v656_v56 = vrot.slane %v642_v47, %v4411_v31  ;;  %v624_v46 = vrot.slane %v610_v38, %v4421_v40 }
 0x283   : > { %v636_v52 = vpop.permute.xlu1 %635 }
 0x284   : > { %v657_v53 = vcombine.low %v632_v37, %v636_v52  ;;  %v658_v54 = vcombine.high %v632_v37, %v636_v52  ;;  %v594_v37 = vcombine.high %v568_v9, %v576_v10  ;;  %v4480_v52 = vld [vmem:[%s395_s24] ss:$0 sm:$0xff] }
 0x286   : > { %v665_v57 = vrot.slane %v657_v53, %v4411_v31  ;;  %v672_v58 = vrot.slane %v658_v54, %v4411_v31  ;;  %v608_v45 = vrot.slane %v594_v37, %v4421_v40 }
 0x288   : > { %v673_v63 = vcombine.low %v649_v55, %v665_v57  ;;  %v674_v1 = vcombine.high %v649_v55, %v665_v57  ;;  %v689_v2 = vcombine.low %v656_v56, %v672_v58  ;;  %v690_v3 = vcombine.high %v656_v56, %v672_v58  ;;  %v4486_v56 = vld [vmem:[%s4956_s1 + $0x8] sm:$0xff] }
 0x289   : > { %v627_v48 = vcombine.low %v608_v45, %v624_v46  ;;  %v628_v50 = vcombine.high %v608_v45, %v624_v46 }
 0x28a   : > { %v681_v5 = vrot.slane %v673_v63, %v4421_v40  ;;  %v688_v6 = vrot.slane %v674_v1, %v4421_v40  ;;  %v697_v7 = vrot.slane %v689_v2, %v4421_v40  ;;  %v704_v8 = vrot.slane %v690_v3, %v4421_v40 }
 0x28c   : > { %v709_v13 = vcombine.low %v681_v5, %v688_v6  ;;  %v3709_v15 = vcombine.high %v681_v5, %v688_v6  ;;  %v725_v16 = vcombine.low %v697_v7, %v704_v8  ;;  %v3710_v17 = vcombine.high %v697_v7, %v704_v8  ;;  %v4502_v6 = vld [vmem:[%s4956_s1 + $0x18] sm:$0xff] }
 0x28e   : > { %v716_v21 = vrot.slane %v709_v13, %v4411_v31  ;;  %v724_v22 = vrot.slane %v3709_v15, %v4411_v31  ;;  %v732_v23 = vrot.slane %v725_v16, %v4411_v31  ;;  %v740_v24 = vrot.slane %v3710_v17, %v4411_v31 }
 0x290   : > { %v741_v27 = vcombine.low %v716_v21, %v724_v22  ;;  %v757_v28 = vcombine.low %v732_v23, %v740_v24  ;;  %v742_v34 = vcombine.high %v716_v21, %v724_v22  ;;  %v758_v35 = vcombine.high %v732_v23, %v740_v24 }
 0x292   : > { %v749_v29 = vrot.slane %v741_v27, %v4421_v40  ;;  %v765_v30 = vrot.slane %v757_v28, %v4421_v40  ;;  %v756_v42 = vrot.slane %v742_v34, %v4421_v40  ;;  %v772_v43 = vrot.slane %v758_v35, %v4421_v40 }
 0x294   : > { %v773_v36 = vcombine.low %v749_v29, %v765_v30  ;;  %v774_v41 = vcombine.high %v749_v29, %v765_v30  ;;  %v775_v47 = vcombine.low %v756_v42, %v772_v43  ;;  %v776_v49 = vcombine.high %v756_v42, %v772_v43 }
 0x296   : > { %3886 = vmatpush3.xpose.msk.msra.mxu1 %vm925_vm2, %v773_v36 }
 0x297   : > { %3890 = vmatprep.subr.mxu1 %v4230_v4 }
 0x299   : > { %3888 = vmatmul.mubr.msk.f32.vlgmr.msra.gmra.mrb[0].mxu1 %vm925_vm2, %v625_v39 }
 0x29a   : > { %3891 = vmatpush3.xpose.msk.msra.mxu1 %vm925_vm2, %v774_v41  ;;  %3892 = vmatprep.mubr.msk.f32.mxu1 %vm4231_vm1, %v4230_v4 }
 0x29b   : > { %3895 = vmatprep.subr.mxu1 %v4230_v4 }
 0x29d   : > { %3893 = vmatmul.mubr.msk.f32.vlgmr.msra.gmra.mrb[2].mxu1 %vm925_vm2, %v626_v44 }
 0x29e   : > { %3896 = vmatpush3.xpose.msk.msra.mxu1 %vm925_vm2, %v775_v47  ;;  %3897 = vmatprep.mubr.msk.f32.mxu1 %vm4231_vm1, %v4230_v4 }
 0x29f   : > { %3900 = vmatprep.subr.mxu1 %v4230_v4 }
 0x2a1   : > { %3898 = vmatmul.mubr.msk.f32.vlgmr.msra.gmra.mrb[4].mxu1 %vm925_vm2, %v627_v48 }
 0x2a2   : > { %3901 = vmatpush3.xpose.msk.msra.mxu1 %vm925_vm2, %v776_v49  ;;  %3902 = vmatprep.mubr.msk.f32.mxu1 %vm4231_vm1, %v4230_v4 }
 0x2a3   : > { %3905 = vmatprep.subr.mxu1 %v4230_v4 }
 0x2a5   : > { %3903 = vmatmul.mubr.msk.f32.vlgmr.msra.gmra.mrb[6].mxu1 %vm925_vm2, %v628_v50 }
 0x2a6   : > { %3907 = vmatprep.mubr.msk.f32.mxu1 %vm4231_vm1, %v4230_v4 }
 0x36c   : > { %v998_v53 = vpop.f32.mrb[0].mxu1 }
 0x36d   : > { %v999_v54 = vadd.f32 %v998_v53, %v4478_v51  ;;  %v3889_v55 = vpop.f32.mrb[1].mxu1 }
 0x36f   : > { %v1236_v57 = vadd.f32 %v4480_v52, %v999_v54 }
 0x370   : > { %v1074_v58 = vpop.f32.mrb[2].mxu1 }
 0x371   : > { %v1075_v59 = vadd.f32 %v1074_v58, %v4486_v56  ;;  %v3894_v60 = vpop.f32.mrb[3].mxu1  ;;  %v1240_v61 = vsel %vm925_vm2, %v1236_v57, -inf }
 0x372   : > { %1241 = vmax.xlane.f32.xlu1 %v1240_v61 }
 0x373   : > { %v1237_v63 = vadd.f32 %v4480_v52, %v1075_v59 }
 0x374   : > { %v1150_v1 = vpop.f32.mrb[4].mxu1 }
 0x375   : > { %v1151_v2 = vadd.f32 %v1150_v1, %v4494_v62  ;;  %v3899_v3 = vpop.f32.mrb[5].mxu1  ;;  %v1243_v5 = vsel %vm925_vm2, %v1237_v63, -inf }
 0x376   : > { %1244 = vmax.xlane.f32.xlu0 %v1243_v5 }
 0x377   : > { %v1238_v7 = vadd.f32 %v4480_v52, %v1151_v2 }
 0x378   : > { %v1226_v8 = vpop.f32.mrb[6].mxu1 }
 0x379   : > { %v1227_v9 = vadd.f32 %v1226_v8, %v4502_v6  ;;  %v3904_v10 = vpop.f32.mrb[7].mxu1  ;;  %v1246_v11 = vsel %vm925_vm2, %v1238_v7, -inf }
 0x37a   : > { %1247 = vmax.xlane.f32.xlu0 %v1246_v11 }
 0x37b   : > { %v1239_v12 = vadd.f32 %v4480_v52, %v1227_v9 }
 0x37d   : > { %v1249_v13 = vsel %vm925_vm2, %v1239_v12, -inf }
 0x37e   : > { %1250 = vmax.xlane.f32.xlu1 %v1249_v13 }
 0x38f   : > { %779 = vrot.lane.b32.xlu1 %v4395_v18, %s4973_s22 }
 0x390   : > { %777 = vrot.lane.b32.xlu0 %v4385_v14, %s4973_s22 }
 0x3ff   : > { %v1242_v15 = vpop.xlane.xlu1 %1241 }
 0x400   : > { %v1252_v16 = vsub.f32 %v1236_v57, %v1242_v15 }
 0x402   : > { %v1256_v17 = vmul.f32 1.442695, %v1252_v16 }
 0x403   : > { %v1245_v21 = vpop.xlane.xlu0 %1244 }
 0x404   : > { %4122 = vpow2.f32 %v1256_v17  ;;  %v1253_v22 = vsub.f32 %v1237_v63, %v1245_v21 }
 0x406   : > { %v1258_v23 = vmul.f32 1.442695, %v1253_v22 }
 0x407   : > { %v1248_v24 = vpop.xlane.xlu0 %1247 }
 0x408   : > { %4124 = vpow2.f32 %v1258_v23  ;;  %v1254_v25 = vsub.f32 %v1238_v7, %v1248_v24 }
 0x40a   : > { %v1260_v26 = vmul.f32 1.442695, %v1254_v25 }
 0x40b   : > { %v1251_v27 = vpop.xlane.xlu1 %1250  ;;  %v778_v37 = vpop.permute.xlu0 %777 }
 0x40c   : > { %4126 = vpow2.f32 %v1260_v26  ;;  %v1255_v28 = vsub.f32 %v1239_v12, %v1251_v27 }
 0x40e   : > { %v4513_v29 = vpop.eup %4122  ;;  %v1262_v18 = vmul.f32 1.442695, %v1255_v28 }
 0x40f   : > { %v1264_v14 = vsel %vm925_vm2, %v4513_v29, 0.0  ;;  %v780_v38 = vpop.permute.xlu1 %779 }
 0x410   : > { %4128 = vpow2.f32 %v1262_v18  ;;  %1265 = vadd.xlane.f32.xlu0 %v1264_v14 }
 0x412   : > { %v4125_v30 = vpop.eup %4124 }
 0x413   : > { %v1267_v32 = vsel %vm925_vm2, %v4125_v30, 0.0 }
 0x414   : > { %1268 = vadd.xlane.f32.xlu1 %v1267_v32 }
 0x416   : > { %v4518_v33 = vpop.eup %4126 }
 0x417   : > { %v1270_v34 = vsel %vm925_vm2, %v4518_v33, 0.0 }
 0x418   : > { %1271 = vadd.xlane.f32.xlu0 %v1270_v34 }
 0x41a   : > { %v4522_v35 = vpop.eup %4128 }
 0x41b   : > { %v1273_v36 = vsel %vm925_vm2, %v4522_v35, 0.0 }
 0x41c   : > { %1274 = vadd.xlane.f32.xlu1 %v1273_v36 }
 0x42d   : > { %781 = vrot.lane.b32.xlu1 %v4399_v19, %s4973_s22 }
 0x42e   : > { %783 = vrot.lane.b32.xlu0 %v4403_v20, %s4973_s22 }
 0x49d   : > { %v1266_v39 = vpop.xlane.xlu0 %1265 }
 0x49e   : > { %4130 = vrcp.f32 %v1266_v39 }
 0x4a1   : > { %v1269_v41 = vpop.xlane.xlu1 %1268 }
 0x4a2   : > { %4132 = vrcp.f32 %v1269_v41 }
 0x4a5   : > { %v1272_v42 = vpop.xlane.xlu0 %1271 }
 0x4a6   : > { %4134 = vrcp.f32 %v1272_v42 }
 0x4a8   : > { %v4131_v11 = vpop.eup %4130 }
 0x4a9   : > { %v784_v43 = vpop.permute.xlu0 %783  ;;  %v1275_v44 = vpop.xlane.xlu1 %1274  ;;  %v1280_v18 = vmul.f32 %v4131_v11, %v4513_v29 }
 0x4aa   : > { %v805_v45 = vcombine.low %v780_v38, %v784_v43  ;;  %v806_v46 = vcombine.high %v780_v38, %v784_v43  ;;  %4136 = vrcp.f32 %v1275_v44 }
 0x4ac   : > { %v813_v50 = vrot.slane %v805_v45, %v4411_v31  ;;  %v820_v19 = vrot.slane %v806_v46, %v4411_v31  ;;  %v4133_v17 = vpop.eup %4132 }
 0x4ad   : > { %v782_v47 = vpop.permute.xlu1 %781  ;;  %v1281_v14 = vmul.f32 %v4133_v17, %v4125_v30 }
 0x4ae   : > { %v789_v48 = vcombine.low %v778_v37, %v782_v47  ;;  %v790_v49 = vcombine.high %v778_v37, %v782_v47 }
 0x4b0   : > { %v797_v53 = vrot.slane %v789_v48, %v4411_v31  ;;  %v804_v20 = vrot.slane %v790_v49, %v4411_v31  ;;  %v4135_v23 = vpop.eup %4134 }
 0x4b1   : > { %v1282_v36 = vmul.f32 %v4135_v23, %v4518_v33 }
 0x4b2   : > { %v821_v54 = vcombine.low %v797_v53, %v813_v50  ;;  %v822_v55 = vcombine.high %v797_v53, %v813_v50  ;;  %v837_v57 = vcombine.low %v804_v20, %v820_v19  ;;  %v838_v58 = vcombine.high %v804_v20, %v820_v19 }
 0x4b4   : > { %v829_v59 = vrot.slane %v821_v54, %v4421_v40  ;;  %v836_v60 = vrot.slane %v822_v55, %v4421_v40  ;;  %v845_v61 = vrot.slane %v837_v57, %v4421_v40  ;;  %v852_v63 = vrot.slane %v838_v58, %v4421_v40  ;;  %v4137_v28 = vpop.eup %4136  ;;  %v4098_v55 = vld [vmem:[%s4960_s5] sm:$0xff]  }
 0x4b5   : > { %v1283_v37 = vmul.f32 %v4137_v28, %v4522_v35 }
 0x4b6   : > { %v857_v1 = vcombine.low %v829_v59, %v836_v60  ;;  %v3711_v2 = vcombine.high %v829_v59, %v836_v60  ;;  %v873_v3 = vcombine.low %v845_v61, %v852_v63  ;;  %v3712_v5 = vcombine.high %v845_v61, %v852_v63 }
 0x4b8   : > { %v864_v7 = vrot.slane %v857_v1, %v4411_v31  ;;  %v872_v8 = vrot.slane %v3711_v2, %v4411_v31  ;;  %v880_v9 = vrot.slane %v873_v3, %v4411_v31  ;;  %v888_v10 = vrot.slane %v3712_v5, %v4411_v31  ;;  %v4099_v3 = vld [vmem:[%s4960_s5 + $0x8] sm:$0xff]  }
 0x4ba   : > { %v889_v12 = vcombine.low %v864_v7, %v872_v8  ;;  %v905_v13 = vcombine.low %v880_v9, %v888_v10  ;;  %v890_v15 = vcombine.high %v864_v7, %v872_v8  ;;  %v906_v16 = vcombine.high %v880_v9, %v888_v10 }
 0x4bc   : > { %v897_v21 = vrot.slane %v889_v12, %v4421_v40  ;;  %v913_v22 = vrot.slane %v905_v13, %v4421_v40  ;;  %v904_v24 = vrot.slane %v890_v15, %v4421_v40  ;;  %v920_v25 = vrot.slane %v906_v16, %v4421_v40 }
 0x4be   : > { %v921_v26 = vcombine.low %v897_v21, %v913_v22  ;;  %v922_v27 = vcombine.high %v897_v21, %v913_v22  ;;  %v923_v32 = vcombine.low %v904_v24, %v920_v25  ;;  %v924_v34 = vcombine.high %v904_v24, %v920_v25 }
 0x4c0   : > { %3906 = vmatpush3.msra.mxu1 %v921_v26  ;;  %3911 = vmatpush3.msra.mxu0 %v922_v27 }
 0x4c1   : > { %3908 = vmatmul.mubr.msk.f32.vlgmr.msra.gmra.mrb[8].mxu1 %vm925_vm2, %v1280_v18  ;;  %3913 = vmatmul.mubr.msk.f32.vlgmr.msra.gmra.mrb[4].mxu0 %vm925_vm2, %v1281_v14 }
 0x4c2   : > { %3915 = vmatprep.subr.mxu1 %v4230_v4  ;;  %3920 = vmatprep.subr.mxu0 %v4230_v4 }
 0x4c3   : > { %3916 = vmatpush3.msra.mxu1 %v923_v32  ;;  %3921 = vmatpush3.msra.mxu0 %v924_v34 }
 0x4c4   : > { %3917 = vmatprep.mubr.msk.f32.mxu1 %vm4231_vm1, %v4230_v4  ;;  %3922 = vmatprep.mubr.msk.f32.mxu0 %vm4231_vm1, %v4230_v4 }
 0x4c5   : > { %3918 = vmatmul.mubr.msk.f32.vlgmr.msra.gmra.mrb[10].mxu1 %vm925_vm2, %v1282_v36  ;;  %3923 = vmatmul.mubr.msk.f32.vlgmr.msra.gmra.mrb[6].mxu0 %vm925_vm2, %v1283_v37 }
 0x4c6   : > { %3925 = vmatprep.subr.bf16.mxu1 %v4230_v4  ;;  %3929 = vmatprep.mubr.msk.bf16.mxu1 %vm4231_vm1, %v4230_v4 }
 0x4c7   : > { %3933 = vmatprep.subr.bf16.mxu0 %v4230_v4  ;;  %3937 = vmatprep.mubr.msk.bf16.mxu0 %vm4231_vm1, %v4230_v4 }
 0x4c8   : > { %3926 = vmatpush3.bf16.msra.mxu1 %v4098_v55 }
 0x4c9   : > { %3927 = vmatprep.subr.bf16.mxu1 %v4230_v4 }
 0x4cc   : > { %3928 = vmatpush3.bf16.msra.mxu1 %v4099_v3 }
 0x4cd   : > { %3941 = vmatprep.subr.bf16.mxu1 %v4230_v4 }
 0x594   : > { %v1353_v29 = vpop.f32.mrb[8].mxu1  ;;  %v1426_v30 = vpop.f32.mrb[4].mxu0 }
 0x595   : > { %v3909_v33 = vpop.f32.mrb[9].mxu1  ;;  %v3914_v35 = vpop.f32.mrb[5].mxu0 }
 0x598   : > { %v1499_v38 = vpop.f32.mrb[10].mxu1  ;;  %v1572_v39 = vpop.f32.mrb[6].mxu0 }
 0x599   : > { %v1576_v41 = vcombine.low %v1353_v29, %v1499_v38  ;;  %v1577_v42 = vcombine.high %v1353_v29, %v1499_v38  ;;  %v1592_v43 = vcombine.low %v1426_v30, %v1572_v39  ;;  %v1593_v44 = vcombine.high %v1426_v30, %v1572_v39  ;;  %v3919_v45 = vpop.f32.mrb[11].mxu1  ;;  %v3924_v46 = vpop.f32.mrb[7].mxu0  ;;  %v4100_v39 = vld [vmem:[%s4962_s7] sm:$0xff]  }
 0x59a   : > { %3934 = vmatpush3.bf16.msra.mxu0 %v4100_v39 }
 0x59b   : > { %v1584_v47 = vrot.slane %v1576_v41, %v4411_v31  ;;  %v1591_v48 = vrot.slane %v1577_v42, %v4411_v31  ;;  %v1600_v49 = vrot.slane %v1592_v43, %v4411_v31  ;;  %v1607_v50 = vrot.slane %v1593_v44, %v4411_v31  ;;  %v4101_v41 = vld [vmem:[%s4963_s8] sm:$0xff]   ;;  %v4103_v42 = vld [vmem:[%s4963_s8 + $0x8] sm:$0xff]   ;;  %3935 = vmatprep.subr.bf16.mxu0 %v4230_v4 }
 0x59d   : > { %v1608_v19 = vcombine.low %v1584_v47, %v1600_v49  ;;  %v1609_v53 = vcombine.high %v1584_v47, %v1600_v49  ;;  %v1624_v20 = vcombine.low %v1591_v48, %v1607_v50  ;;  %v1625_v54 = vcombine.high %v1591_v48, %v1607_v50  ;;  %v3731_v47 = vld [vmem:[%s4961_s6] ss:$0 sm:$0xff] }
 0x59f   : > { %v1616_v57 = vrot.slane %v1608_v19, %v4421_v40  ;;  %v1623_v58 = vrot.slane %v1609_v53, %v4421_v40  ;;  %v1632_v59 = vrot.slane %v1624_v20, %v4421_v40  ;;  %v1639_v60 = vrot.slane %v1625_v54, %v4421_v40  ;;  %v4104_v19 = vld [vmem:[%s4964_s9] sm:$0xff]   ;;  %v4105_v53 = vld [vmem:[%s4964_s9 + $0x8] sm:$0xff]   ;;  %v4106_v20 = vld [vmem:[%s4964_s9 + $0x10] sm:$0xff]  }
 0x5a0   : > { %v4107_v54 = vld [vmem:[%s4964_s9 + $0x18] sm:$0xff]  }
 0x5a1   : > { %v1644_v61 = vcombine.low %v1616_v57, %v1623_v58  ;;  %v3726_v63 = vcombine.high %v1616_v57, %v1623_v58  ;;  %v1660_v1 = vcombine.low %v1632_v59, %v1639_v60  ;;  %v3727_v2 = vcombine.high %v1632_v59, %v1639_v60 }
 0x5a3   : > { %v1651_v5 = vrot.slane %v1644_v61, %v4411_v31  ;;  %v1659_v7 = vrot.slane %v3726_v63, %v4411_v31  ;;  %v1667_v8 = vrot.slane %v1660_v1, %v4411_v31  ;;  %v1675_v9 = vrot.slane %v3727_v2, %v4411_v31 }
 0x5a5   : > { %v1677_v10 = vcombine.high %v1651_v5, %v1659_v7  ;;  %v1693_v11 = vcombine.high %v1667_v8, %v1675_v9  ;;  %v1676_v12 = vcombine.low %v1651_v5, %v1659_v7  ;;  %v1692_v13 = vcombine.low %v1667_v8, %v1675_v9 }
 0x5a7   : > { %v1691_v15 = vrot.slane %v1677_v10, %v4421_v40  ;;  %v1707_v16 = vrot.slane %v1693_v11, %v4421_v40  ;;  %v1684_v17 = vrot.slane %v1676_v12, %v4421_v40  ;;  %v1700_v21 = vrot.slane %v1692_v13, %v4421_v40 }
 0x5a9   : > { %v1710_v22 = vcombine.low %v1691_v15, %v1707_v16  ;;  %v1709_v23 = vcombine.high %v1684_v17, %v1700_v21  ;;  %v1711_v24 = vcombine.high %v1691_v15, %v1707_v16  ;;  %v1708_v25 = vcombine.low %v1684_v17, %v1700_v21 }
 0x5ab   : > { %1717 = vrot.lane.b32.xlu0 %v1710_v22, %s4972_s16  ;;  %1713 = vrot.lane.b32.xlu1 %v1709_v23, %s4971_s14  ;;  %s4979_s14 = smov 96  }
 0x5af   : > { %1721 = vrot.lane.b32.xlu1 %v1711_v24, %s4970_s15  ;;  %s4980_s15 = smov 104  }
 0x61d   : > { %v1714_v26 = vpop.permute.xlu1 %1713  ;;  %v1718_v27 = vpop.permute.xlu0 %1717 }
 0x61e   : > { %v1724_v28 = vsel %vm925_vm2, %v1708_v25, %v1714_v26  ;;  %v4108_v26 = vld [vmem:[%s4959_s4 + $0x10] sm:$0xff]  }
 0x61f   : > { %v1726_v14 = vsel %vm1725_vm3, %v1724_v28, %v1718_v27  ;;  %v4109_v27 = vld [vmem:[%s4959_s4 + $0x18] sm:$0xff]  }
 0x621   : > { %v1722_v18 = vpop.permute.xlu1 %1721 }
 0x622   : > { %v1728_v32 = vsel %vm1727_vm4, %v1726_v14, %v1722_v18 }
 0x623   : > { %v1729_v34 = vpack.c.bf16 %v1728_v32, %v1728_v32 }
 0x625   : > { %3930 = vmatmul.mubr.msk.bf16.vlgmr.msra.gmra.mrb[12].mxu1 %vm413_vm0, %v1729_v34  ;;  %v3751_v34 = vld [vmem:[%s4958_s3 + $0x1] ss:$0 sm:$0xff] }
 0x626   : > { %3945 = vmatprep.mubr.msk.bf16.mxu1 %vm4231_vm1, %v4230_v4  ;;  %3942 = vmatpush3.bf16.msra.mxu1 %v4101_v41 }
 0x627   : > { %3943 = vmatprep.subr.bf16.mxu1 %v4230_v4 }
 0x62a   : > { %3944 = vmatpush3.bf16.msra.mxu1 %v4103_v42 }
 0x62b   : > { %3961 = vmatprep.subr.bf16.mxu1 %v4230_v4 }
 0x6f8   : > { %v1779_v36 = vpop.f32.mrb[12].mxu1 }
 0x6f9   : > { %v4599_v37 = vadd.f32 %v1779_v36, %v4359_v0  ;;  %v3931_v29 = vpop.f32.mrb[13].mxu1  ;;  %v4102_v0 = vld [vmem:[%s4962_s7 + $0x8] sm:$0xff]  }
 0x6fa   : > { %v1782_v30 = vpop.f32.mrb[14].mxu1  ;;  %3936 = vmatpush3.bf16.msra.mxu0 %v4102_v0 }
 0x6fb   : > { %v3932_v33 = vpop.f32.mrb[15].mxu1  ;;  %v1803_v35 = vmul.f32 %v4599_v37, %v4599_v37  ;;  %3949 = vmatprep.subr.bf16.mxu0 %v4230_v4 }
 0x6fd   : > { %v1804_v38 = vsel %vm413_vm0, %v1803_v35, 0.0 }
 0x6fe   : > { %1805 = vadd.xlane.f32.xlu0 %v1804_v38 }
 0x78b   : > { %v1806_v43 = vpop.xlane.xlu0 %1805 }
 0x78c   : > { %v1807_v44 = vmul.f32 0.03125, %v1806_v43 }
 0x78e   : > { %v1808_v45 = vadd.f32 1e-06, %v1807_v44 }
 0x790   : > { %4138 = vrsqrt.f32 %v1808_v45 }
 0x79a   : > { %v4139_v46 = vpop.eup %4138 }
 0x79b   : > { %v1810_v48 = vmul.f32 %v4139_v46, %v4599_v37 }
 0x79d   : > { %v1815_v49 = vmul.f32 %v3731_v47, %v1810_v48 }
 0x79f   : > { %v1816_v50 = vpack.c.bf16 %v1815_v49, %v1815_v49 }
 0x7a1   : > { %3938 = vmatmul.mubr.msk.bf16.vlgmr.msra.gmra.mrb[8].mxu0 %vm413_vm0, %v1816_v50  ;;  %3946 = vmatmul.mubr.msk.bf16.vlgmr.msra.gmra.mrb[16].mxu1 %vm413_vm0, %v1816_v50 }
 0x7a2   : > { %3957 = vmatprep.mubr.msk.bf16.mxu0 %vm4231_vm1, %v4230_v4  ;;  %3965 = vmatprep.mubr.msk.bf16.mxu1 %vm4231_vm1, %v4230_v4 }
 0x7a3   : > { %3950 = vmatpush3.bf16.msra.mxu0 %v4104_v19  ;;  %3962 = vmatpush3.bf16.msra.mxu1 %v4108_v26 }
 0x7a4   : > { %3951 = vmatprep.subr.bf16.mxu0 %v4230_v4  ;;  %3963 = vmatprep.subr.bf16.mxu1 %v4230_v4 }
 0x7a7   : > { %3952 = vmatpush3.bf16.msra.mxu0 %v4105_v53  ;;  %3964 = vmatpush3.bf16.msra.mxu1 %v4109_v27 }
 0x7a8   : > { %3953 = vmatprep.subr.bf16.mxu0 %v4230_v4  ;;  %3969 = vmatprep.subr.mxu1 %v4230_v4 }
 0x7ab   : > { %3954 = vmatpush3.bf16.msra.mxu0 %v4106_v20 }
 0x7ac   : > { %3955 = vmatprep.subr.bf16.mxu0 %v4230_v4 }
 0x7af   : > { %3956 = vmatpush3.bf16.msra.mxu0 %v4107_v54 }
 0x7b0   : > { %3974 = vmatprep.subr.mxu0 %v4230_v4 }
 0x874   : > { %v1866_v55 = vpop.f32.mrb[8].mxu0  ;;  %v1927_v57 = vpop.f32.mrb[16].mxu1 }
 0x875   : > { %v1873_v58 = vmul.f32 0.044715, %v1866_v55  ;;  %v3939_v59 = vpop.f32.mrb[9].mxu0  ;;  %v3947_v60 = vpop.f32.mrb[17].mxu1  ;;  %v1872_v10 = vmul.f32 0.5, %v1866_v55 }
 0x876   : > { %v1869_v61 = vpop.f32.mrb[10].mxu0  ;;  %v1930_v63 = vpop.f32.mrb[18].mxu1 }
 0x877   : > { %v1874_v1 = vmul.f32 %v1873_v58, %v1866_v55  ;;  %v3940_v2 = vpop.f32.mrb[11].mxu0  ;;  %v3948_v3 = vpop.f32.mrb[19].mxu1 }
 0x879   : > { %v1875_v5 = vmul.f32 %v1874_v1, %v1866_v55 }
 0x87b   : > { %v1876_v7 = vadd.f32 %v1875_v5, %v1866_v55 }
 0x87d   : > { %v1877_v8 = vmul.f32 0.7978846, %v1876_v7 }
 0x87f   : > { %4140 = vtanh.f32 %v1877_v8 }
 0x889   : > { %v4141_v9 = vpop.eup %4140 }
 0x88a   : > { %v1879_v11 = vadd.f32 1.0, %v4141_v9 }
 0x88c   : > { %v1880_v12 = vmul.f32 %v1879_v11, %v1872_v10 }
 0x88e   : > { %v1933_v13 = vmul.f32 %v1927_v57, %v1880_v12 }
 0x890   : > { %v1934_v15 = vpack.c.bf16 %v1933_v13, %v1933_v13 }
 0x892   : > { %3958 = vmatmul.mubr.msk.bf16.vlgmr.msra.gmra.mrb[12].mxu0 %vm1959_vm5, %v1934_v15 }
 0x893   : > { %3976 = vmatprep.mubr.msk.f32.mxu0 %vm4231_vm1, %v4230_v4 }
 0x965   : > { %v1997_v16 = vpop.f32.mrb[12].mxu0 }
 0x966   : > { %v4650_v17 = vadd.f32 %v1997_v16, %v4599_v37  ;;  %v3959_v21 = vpop.f32.mrb[13].mxu0 }
 0x967   : > { %v2000_v22 = vpop.f32.mrb[14].mxu0 }
 0x968   : > { %v3960_v23 = vpop.f32.mrb[15].mxu0  ;;  %v2015_v24 = vmul.f32 %v4650_v17, %v4650_v17 }
 0x96a   : > { %v2016_v25 = vsel %vm413_vm0, %v2015_v24, 0.0 }
 0x96b   : > { %2017 = vadd.xlane.f32.xlu1 %v2016_v25 }
 0x9f8   : > { %v2018_v28 = vpop.xlane.xlu1 %2017 }
 0x9f9   : > { %v2019_v18 = vmul.f32 0.03125, %v2018_v28 }
 0x9fb   : > { %v2020_v14 = vadd.f32 1e-06, %v2019_v18 }
 0x9fd   : > { %4142 = vrsqrt.f32 %v2020_v14 }
 0xa07   : > { %v4143_v32 = vpop.eup %4142 }
 0xa08   : > { %v2022_v36 = vmul.f32 %v4143_v32, %v4650_v17 }
 0xa0a   : > { %v2027_v37 = vmul.f32 %v3751_v34, %v2022_v36 }
 0xa0c   : > { %v2028_v29 = vpack.c.bf16 %v2027_v37, %v2027_v37 }
 0xa0e   : > { %3966 = vmatmul.mubr.msk.bf16.vlgmr.msra.gmra.mrb[20].mxu1 %vm413_vm0, %v2028_v29 }
 0xa0f   : > { %3971 = vmatprep.mubr.msk.f32.mxu1 %vm4231_vm1, %v4230_v4 }
 0xae1   : > { %v4670_v30 = vpop.f32.mrb[20].mxu1 }
 0xae2   : > { %2088 = vrot.lane.b32.xlu1 %v4670_v30, %s4232_s12  ;;  %2085 = vrot.lane.b32.xlu0 %v4670_v30, %s4233_s13  ;;  %v3967_v33 = vpop.f32.mrb[21].mxu1  ;;  %s4981_s12 = smov 64  }
 0xae3   : > { %v2081_v35 = vpop.f32.mrb[22].mxu1 }
 0xae4   : > { %v3968_v38 = vpop.f32.mrb[23].mxu1 }
 0xae6   : > { %2230 = vrot.lane.b32.xlu1 %v4670_v30, %s4979_s14  ;;  %2091 = vrot.lane.b32.xlu0 %v4670_v30, %s4980_s15 }
 0xb54   : > { %v4680_v39 = vpop.permute.xlu1 %2088  ;;  %v4682_v41 = vpop.permute.xlu0 %2085 }
 0xb55   : > { %2234 = vrot.lane.b32.xlu1 %v4680_v39, %s4979_s14  ;;  %2232 = vrot.lane.b32.xlu0 %v4682_v41, %s4979_s14  ;;  %v2094_v44 = vcombine.low %v4670_v30, %v4680_v39  ;;  %v2095_v45 = vcombine.high %v4670_v30, %v4680_v39 }
 0xb57   : > { %v2102_v49 = vrot.slane %v2094_v44, %v4411_v31  ;;  %v2109_v50 = vrot.slane %v2095_v45, %v4411_v31 }
 0xb58   : > { %v4688_v0 = vpop.permute.xlu0 %2091  ;;  %v2231_v46 = vpop.permute.xlu1 %2230 }
 0xb59   : > { %2236 = vrot.lane.b32.xlu0 %v4688_v0, %s4979_s14  ;;  %v2110_v42 = vcombine.low %v4682_v41, %v4688_v0  ;;  %v2111_v43 = vcombine.high %v4682_v41, %v4688_v0 }
 0xb5b   : > { %v2118_v47 = vrot.slane %v2110_v42, %v4411_v31  ;;  %v2125_v48 = vrot.slane %v2111_v43, %v4411_v31 }
 0xb5d   : > { %v2126_v19 = vcombine.low %v2102_v49, %v2118_v47  ;;  %v2127_v53 = vcombine.high %v2102_v49, %v2118_v47  ;;  %v2142_v20 = vcombine.low %v2109_v50, %v2125_v48  ;;  %v2143_v54 = vcombine.high %v2109_v50, %v2125_v48 }
 0xb5f   : > { %v2134_v60 = vrot.slane %v2126_v19, %v4421_v40  ;;  %v2141_v61 = vrot.slane %v2127_v53, %v4421_v40  ;;  %v2150_v63 = vrot.slane %v2142_v20, %v4421_v40  ;;  %v2157_v1 = vrot.slane %v2143_v54, %v4421_v40 }
 0xb61   : > { %v2162_v11 = vcombine.low %v2134_v60, %v2141_v61  ;;  %v3755_v12 = vcombine.high %v2134_v60, %v2141_v61  ;;  %v2178_v13 = vcombine.low %v2150_v63, %v2157_v1  ;;  %v3756_v15 = vcombine.high %v2150_v63, %v2157_v1 }
 0xb63   : > { %v2169_v28 = vrot.slane %v2162_v11, %v4411_v31  ;;  %v2177_v18 = vrot.slane %v3755_v12, %v4411_v31  ;;  %v2185_v14 = vrot.slane %v2178_v13, %v4411_v31  ;;  %v2193_v32 = vrot.slane %v3756_v15, %v4411_v31 }
 0xb65   : > { %v2194_v43 = vcombine.low %v2169_v28, %v2177_v18  ;;  %v2210_v44 = vcombine.low %v2185_v14, %v2193_v32  ;;  %v2195_v19 = vcombine.high %v2169_v28, %v2177_v18  ;;  %v2211_v54 = vcombine.high %v2185_v14, %v2193_v32 }
 0xb67   : > { %v2202_v53 = vrot.slane %v2194_v43, %v4421_v40  ;;  %v2218_v20 = vrot.slane %v2210_v44, %v4421_v40  ;;  %v2209_v60 = vrot.slane %v2195_v19, %v4421_v40  ;;  %v2225_v1 = vrot.slane %v2211_v54, %v4421_v40 }
 0xb69   : > { %v2226_v61 = vcombine.low %v2202_v53, %v2218_v20  ;;  %v2227_v63 = vcombine.high %v2202_v53, %v2218_v20 }
 0xbc7   : > { %v2235_v55 = vpop.permute.xlu1 %2234  ;;  %v2233_v57 = vpop.permute.xlu0 %2232 }
 0xbc8   : > { %v2242_v58 = vcombine.low %v2231_v46, %v2235_v55  ;;  %v2243_v59 = vcombine.high %v2231_v46, %v2235_v55 }
 0xbca   : > { %v2250_v7 = vrot.slane %v2242_v58, %v4411_v31  ;;  %v2257_v8 = vrot.slane %v2243_v59, %v4411_v31 }
 0xbcb   : > { %v2237_v2 = vpop.permute.xlu0 %2236 }
 0xbcc   : > { %v2258_v3 = vcombine.low %v2233_v57, %v2237_v2  ;;  %v2259_v5 = vcombine.high %v2233_v57, %v2237_v2 }
 0xbce   : > { %v2266_v9 = vrot.slane %v2258_v3, %v4411_v31  ;;  %v2273_v10 = vrot.slane %v2259_v5, %v4411_v31  ;;  %v2228_v5 = vcombine.low %v2209_v60, %v2225_v1 }
 0xbd0   : > { %v2274_v16 = vcombine.low %v2250_v7, %v2266_v9  ;;  %v2275_v21 = vcombine.high %v2250_v7, %v2266_v9  ;;  %v2290_v22 = vcombine.low %v2257_v8, %v2273_v10  ;;  %v2291_v23 = vcombine.high %v2257_v8, %v2273_v10 }
 0xbd1   : > { %v2229_v7 = vcombine.high %v2209_v60, %v2225_v1 }
 0xbd2   : > { %v2282_v24 = vrot.slane %v2274_v16, %v4421_v40  ;;  %v2289_v25 = vrot.slane %v2275_v21, %v4421_v40  ;;  %v2298_v26 = vrot.slane %v2290_v22, %v4421_v40  ;;  %v2305_v27 = vrot.slane %v2291_v23, %v4421_v40 }
 0xbd4   : > { %v2310_v34 = vcombine.low %v2282_v24, %v2289_v25  ;;  %v3757_v36 = vcombine.high %v2282_v24, %v2289_v25  ;;  %v2326_v37 = vcombine.low %v2298_v26, %v2305_v27  ;;  %v3758_v29 = vcombine.high %v2298_v26, %v2305_v27 }
 0xbd6   : > { %v2317_v33 = vrot.slane %v2310_v34, %v4411_v31  ;;  %v2325_v35 = vrot.slane %v3757_v36, %v4411_v31  ;;  %v2333_v38 = vrot.slane %v2326_v37, %v4411_v31  ;;  %v2341_v42 = vrot.slane %v3758_v29, %v4411_v31 }
 0xbd8   : > { %v2342_v45 = vcombine.low %v2317_v33, %v2325_v35  ;;  %v2343_v46 = vcombine.high %v2317_v33, %v2325_v35  ;;  %v2358_v47 = vcombine.low %v2333_v38, %v2341_v42  ;;  %v2359_v48 = vcombine.high %v2333_v38, %v2341_v42 }
 0xbda   : > { %v2350_v49 = vrot.slane %v2342_v45, %v4421_v40  ;;  %v2366_v50 = vrot.slane %v2358_v47, %v4421_v40  ;;  %v2357_v58 = vrot.slane %v2343_v46, %v4421_v40  ;;  %v2373_v59 = vrot.slane %v2359_v48, %v4421_v40 }
 0xbdc   : > { %v2374_v55 = vcombine.low %v2350_v49, %v2366_v50  ;;  %v2375_v57 = vcombine.high %v2350_v49, %v2366_v50  ;;  %v2376_v2 = vcombine.low %v2357_v58, %v2373_v59  ;;  %v2377_v3 = vcombine.high %v2357_v58, %v2373_v59 }
 0xbde   : > { %3970 = vmatpush3.xpose.msk.msra.mxu1 %vm925_vm2, %v2374_v55  ;;  %3975 = vmatpush3.xpose.msk.msra.mxu0 %vm925_vm2, %v2375_v57 }
 0xbdf   : > { %3979 = vmatprep.subr.mxu1 %v4230_v4  ;;  %3984 = vmatprep.subr.mxu0 %v4230_v4 }
 0xbe1   : > { %3972 = vmatmul.mubr.msk.f32.vlgmr.msra.gmra.mrb[24].mxu1 %vm925_vm2, %v2226_v61  ;;  %3977 = vmatmul.mubr.msk.f32.vlgmr.msra.gmra.mrb[16].mxu0 %vm925_vm2, %v2227_v63 }
 0xbe2   : > { %3980 = vmatpush3.xpose.msk.msra.mxu1 %vm925_vm2, %v2376_v2  ;;  %3985 = vmatpush3.xpose.msk.msra.mxu0 %vm925_vm2, %v2377_v3 }
 0xbe3   : > { %3981 = vmatprep.mubr.msk.f32.mxu1 %vm4231_vm1, %v4230_v4  ;;  %3986 = vmatprep.mubr.msk.f32.mxu0 %vm4231_vm1, %v4230_v4 }
 0xbe4   : > { %3989 = vmatprep.subr.mxu1 %v4230_v4  ;;  %3994 = vmatprep.subr.mxu0 %v4230_v4 }
 0xbe5   : > { %3982 = vmatmul.mubr.msk.f32.vlgmr.msra.gmra.mrb[26].mxu1 %vm925_vm2, %v2228_v5  ;;  %3987 = vmatmul.mubr.msk.f32.vlgmr.msra.gmra.mrb[18].mxu0 %vm925_vm2, %v2229_v7 }
 0xbe6   : > { %3991 = vmatprep.mubr.msk.f32.mxu1 %vm4231_vm1, %v4230_v4  ;;  %3996 = vmatprep.mubr.msk.f32.mxu0 %vm4231_vm1, %v4230_v4 }
 0xcb4   : > { %v2598_v8 = vpop.f32.mrb[24].mxu1  ;;  %v2674_v9 = vpop.f32.mrb[16].mxu0 }
 0xcb5   : > { %v2599_v10 = vadd.f32 %v2598_v8, %v4478_v51  ;;  %v2675_v11 = vadd.f32 %v2674_v9, %v4486_v56  ;;  %v3973_v12 = vpop.f32.mrb[25].mxu1  ;;  %v3978_v13 = vpop.f32.mrb[17].mxu0 }
 0xcb7   : > { %v2830_v15 = vadd.f32 %v4480_v52, %v2599_v10  ;;  %v2831_v16 = vadd.f32 %v4480_v52, %v2675_v11 }
 0xcb8   : > { %v2750_v21 = vpop.f32.mrb[26].mxu1  ;;  %v2826_v22 = vpop.f32.mrb[18].mxu0 }
 0xcb9   : > { %v2751_v23 = vadd.f32 %v2750_v21, %v4494_v62  ;;  %v2827_v24 = vadd.f32 %v2826_v22, %v4502_v6  ;;  %v3983_v25 = vpop.f32.mrb[27].mxu1  ;;  %v3988_v26 = vpop.f32.mrb[19].mxu0  ;;  %v2834_v27 = vsel %vm925_vm2, %v2830_v15, -inf  ;;  %v2837_v51 = vsel %vm925_vm2, %v2831_v16, -inf }
 0xcba   : > { %2835 = vmax.xlane.f32.xlu1 %v2834_v27  ;;  %2838 = vmax.xlane.f32.xlu0 %v2837_v51 }
 0xcbb   : > { %v2832_v56 = vadd.f32 %v4480_v52, %v2751_v23  ;;  %v2833_v28 = vadd.f32 %v4480_v52, %v2827_v24 }
 0xcbd   : > { %v2840_v18 = vsel %vm925_vm2, %v2832_v56, -inf  ;;  %v2843_v14 = vsel %vm925_vm2, %v2833_v28, -inf }
 0xcbe   : > { %2841 = vmax.xlane.f32.xlu0 %v2840_v18  ;;  %2844 = vmax.xlane.f32.xlu1 %v2843_v14 }
 0xccf   : > { %2380 = vrot.lane.b32.xlu1 %v4682_v41, %s4981_s12 }
 0xcd4   : > { %2378 = vrot.lane.b32.xlu0 %v4670_v30, %s4981_s12 }
 0xd47   : > { %v2836_v62 = vpop.xlane.xlu1 %2835  ;;  %v2839_v6 = vpop.xlane.xlu0 %2838 }
 0xd48   : > { %v2846_v32 = vsub.f32 %v2830_v15, %v2836_v62  ;;  %v2847_v34 = vsub.f32 %v2831_v16, %v2839_v6 }
 0xd4a   : > { %v2850_v36 = vmul.f32 1.442695, %v2846_v32  ;;  %v2852_v37 = vmul.f32 1.442695, %v2847_v34 }
 0xd4b   : > { %v2842_v29 = vpop.xlane.xlu0 %2841  ;;  %v2845_v52 = vpop.xlane.xlu1 %2844 }
 0xd4c   : > { %4144 = vpow2.f32 %v2850_v36  ;;  %v2848_v33 = vsub.f32 %v2832_v56, %v2842_v29  ;;  %v2849_v35 = vsub.f32 %v2833_v28, %v2845_v52 }
 0xd4d   : > { %4146 = vpow2.f32 %v2852_v37 }
 0xd4e   : > { %v2854_v38 = vmul.f32 1.442695, %v2848_v33  ;;  %v2856_v42 = vmul.f32 1.442695, %v2849_v35 }
 0xd4f   : > { %v2379_v49 = vpop.permute.xlu0 %2378  ;;  %v2381_v50 = vpop.permute.xlu1 %2380 }
 0xd50   : > { %4148 = vpow2.f32 %v2854_v38 }
 0xd51   : > { %4150 = vpow2.f32 %v2856_v42 }
 0xd56   : > { %v4768_v41 = vpop.eup %4144 }
 0xd57   : > { %v4770_v43 = vpop.eup %4146  ;;  %v2858_v30 = vsel %vm925_vm2, %v4768_v41, 0.0 }
 0xd58   : > { %2859 = vadd.xlane.f32.xlu0 %v2858_v30  ;;  %v2861_v44 = vsel %vm925_vm2, %v4770_v43, 0.0 }
 0xd59   : > { %2862 = vadd.xlane.f32.xlu1 %v2861_v44 }
 0xd5a   : > { %v4776_v45 = vpop.eup %4148 }
 0xd5b   : > { %v4778_v46 = vpop.eup %4150  ;;  %v2864_v47 = vsel %vm925_vm2, %v4776_v45, 0.0 }
 0xd5c   : > { %2865 = vadd.xlane.f32.xlu0 %v2864_v47  ;;  %v2867_v48 = vsel %vm925_vm2, %v4778_v46, 0.0 }
 0xd5d   : > { %2868 = vadd.xlane.f32.xlu1 %v2867_v48 }
 0xd6e   : > { %2382 = vrot.lane.b32.xlu1 %v4680_v39, %s4981_s12 }
 0xd72   : > { %2384 = vrot.lane.b32.xlu0 %v4688_v0, %s4981_s12  ;;  %s3808_s12 = sshll.u32 %s4324_s21, 7  ;;  %s4242_s21 = smov [#allocation2]  }
 0xde5   : > { %v2860_v19 = vpop.xlane.xlu0 %2859 }
 0xde6   : > { %v2863_v53 = vpop.xlane.xlu1 %2862  ;;  %4152 = vrcp.f32 %v2860_v19 }
 0xde7   : > { %4154 = vrcp.f32 %v2863_v53 }
 0xde9   : > { %v2866_v20 = vpop.xlane.xlu0 %2865 }
 0xdea   : > { %v2869_v54 = vpop.xlane.xlu1 %2868  ;;  %4156 = vrcp.f32 %v2866_v20 }
 0xdeb   : > { %4158 = vrcp.f32 %v2869_v54 }
 0xded   : > { %v2385_v55 = vpop.permute.xlu0 %2384 }
 0xdee   : > { %v2406_v57 = vcombine.low %v2381_v50, %v2385_v55  ;;  %v2407_v58 = vcombine.high %v2381_v50, %v2385_v55  ;;  %v2383_v59 = vpop.permute.xlu1 %2382 }
 0xdef   : > { %v2390_v60 = vcombine.low %v2379_v49, %v2383_v59  ;;  %v2391_v61 = vcombine.high %v2379_v49, %v2383_v59 }
 0xdf0   : > { %v2414_v63 = vrot.slane %v2406_v57, %v4411_v31  ;;  %v2421_v1 = vrot.slane %v2407_v58, %v4411_v31  ;;  %v4153_v27 = vpop.eup %4152 }
 0xdf1   : > { %v2398_v39 = vrot.slane %v2390_v60, %v4411_v31  ;;  %v2405_v0 = vrot.slane %v2391_v61, %v4411_v31  ;;  %v4155_v18 = vpop.eup %4154  ;;  %v2874_v37 = vmul.f32 %v4153_v27, %v4768_v41 }
 0xdf2   : > { %v2875_v29 = vmul.f32 %v4155_v18, %v4770_v43 }
 0xdf3   : > { %v2422_v2 = vcombine.low %v2398_v39, %v2414_v63  ;;  %v2423_v3 = vcombine.high %v2398_v39, %v2414_v63  ;;  %v2438_v5 = vcombine.low %v2405_v0, %v2421_v1  ;;  %v2439_v7 = vcombine.high %v2405_v0, %v2421_v1  ;;  %v4110_v63 = vld [vmem:[%s4960_s5 + $0x10] sm:$0xff]  }
 0xdf4   : > { %v4157_v36 = vpop.eup %4156 }
 0xdf5   : > { %v2430_v8 = vrot.slane %v2422_v2, %v4421_v40  ;;  %v2437_v9 = vrot.slane %v2423_v3, %v4421_v40  ;;  %v2446_v10 = vrot.slane %v2438_v5, %v4421_v40  ;;  %v2453_v11 = vrot.slane %v2439_v7, %v4421_v40  ;;  %v4159_v52 = vpop.eup %4158 }
 0xdf6   : > { %v2876_v38 = vmul.f32 %v4157_v36, %v4776_v45  ;;  %v2877_v42 = vmul.f32 %v4159_v52, %v4778_v46 }
 0xdf7   : > { %v2458_v12 = vcombine.low %v2430_v8, %v2437_v9  ;;  %v3759_v13 = vcombine.high %v2430_v8, %v2437_v9  ;;  %v2474_v15 = vcombine.low %v2446_v10, %v2453_v11  ;;  %v3760_v16 = vcombine.high %v2446_v10, %v2453_v11  ;;  %v4111_v9 = vld [vmem:[%s4960_s5 + $0x18] sm:$0xff]  }
 0xdf9   : > { %v2465_v21 = vrot.slane %v2458_v12, %v4411_v31  ;;  %v2473_v22 = vrot.slane %v3759_v13, %v4411_v31  ;;  %v2481_v23 = vrot.slane %v2474_v15, %v4411_v31  ;;  %v2489_v24 = vrot.slane %v3760_v16, %v4411_v31 }
 0xdfb   : > { %v2490_v25 = vcombine.low %v2465_v21, %v2473_v22  ;;  %v2491_v26 = vcombine.high %v2465_v21, %v2473_v22  ;;  %v2506_v51 = vcombine.low %v2481_v23, %v2489_v24  ;;  %v2507_v56 = vcombine.high %v2481_v23, %v2489_v24 }
 0xdfd   : > { %v2498_v28 = vrot.slane %v2490_v25, %v4421_v40  ;;  %v2514_v14 = vrot.slane %v2506_v51, %v4421_v40  ;;  %v2505_v62 = vrot.slane %v2491_v26, %v4421_v40  ;;  %v2521_v6 = vrot.slane %v2507_v56, %v4421_v40 }
 0xdff   : > { %v2522_v32 = vcombine.low %v2498_v28, %v2514_v14  ;;  %v2523_v34 = vcombine.high %v2498_v28, %v2514_v14  ;;  %v2524_v33 = vcombine.low %v2505_v62, %v2521_v6  ;;  %v2525_v35 = vcombine.high %v2505_v62, %v2521_v6 }
 0xe01   : > { %3990 = vmatpush3.msra.mxu1 %v2522_v32  ;;  %3995 = vmatpush3.msra.mxu0 %v2523_v34 }
 0xe02   : > { %3992 = vmatmul.mubr.msk.f32.vlgmr.msra.gmra.mrb[28].mxu1 %vm925_vm2, %v2874_v37  ;;  %3997 = vmatmul.mubr.msk.f32.vlgmr.msra.gmra.mrb[20].mxu0 %vm925_vm2, %v2875_v29 }
 0xe03   : > { %3999 = vmatprep.subr.mxu1 %v4230_v4  ;;  %4004 = vmatprep.subr.mxu0 %v4230_v4 }
 0xe04   : > { %4000 = vmatpush3.msra.mxu1 %v2524_v33  ;;  %4005 = vmatpush3.msra.mxu0 %v2525_v35 }
 0xe05   : > { %4001 = vmatprep.mubr.msk.f32.mxu1 %vm4231_vm1, %v4230_v4  ;;  %4006 = vmatprep.mubr.msk.f32.mxu0 %vm4231_vm1, %v4230_v4 }
 0xe06   : > { %4002 = vmatmul.mubr.msk.f32.vlgmr.msra.gmra.mrb[30].mxu1 %vm925_vm2, %v2876_v38  ;;  %4007 = vmatmul.mubr.msk.f32.vlgmr.msra.gmra.mrb[22].mxu0 %vm925_vm2, %v2877_v42  ;;  %v4112_v38 = vld [vmem:[%s4962_s7 + $0x10] sm:$0xff]  }
 0xe07   : > { %4009 = vmatprep.subr.bf16.mxu1 %v4230_v4  ;;  %4013 = vmatprep.mubr.msk.bf16.mxu1 %vm4231_vm1, %v4230_v4  ;;  %v4113_v42 = vld [vmem:[%s4963_s8 + $0x10] sm:$0xff]  }
 0xe08   : > { %4017 = vmatprep.subr.bf16.mxu0 %v4230_v4  ;;  %4021 = vmatprep.mubr.msk.bf16.mxu0 %vm4231_vm1, %v4230_v4 }
 0xe09   : > { %4010 = vmatpush3.bf16.msra.mxu1 %v4110_v63  ;;  %4018 = vmatpush3.bf16.msra.mxu0 %v4112_v38 }
 0xe0a   : > { %4011 = vmatprep.subr.bf16.mxu1 %v4230_v4  ;;  %4019 = vmatprep.subr.bf16.mxu0 %v4230_v4 }
 0xe0d   : > { %4012 = vmatpush3.bf16.msra.mxu1 %v4111_v9 }
 0xe0e   : > { %4025 = vmatprep.subr.bf16.mxu1 %v4230_v4 }
 0xed5   : > { %v2947_v41 = vpop.f32.mrb[28].mxu1  ;;  %v3020_v43 = vpop.f32.mrb[20].mxu0 }
 0xed6   : > { %v3993_v30 = vpop.f32.mrb[29].mxu1  ;;  %v3998_v44 = vpop.f32.mrb[21].mxu0 }
 0xed9   : > { %v3093_v45 = vpop.f32.mrb[30].mxu1  ;;  %v3166_v46 = vpop.f32.mrb[22].mxu0 }
 0xeda   : > { %v3170_v47 = vcombine.low %v2947_v41, %v3093_v45  ;;  %v3171_v48 = vcombine.high %v2947_v41, %v3093_v45  ;;  %v3186_v49 = vcombine.low %v3020_v43, %v3166_v46  ;;  %v3187_v50 = vcombine.high %v3020_v43, %v3166_v46  ;;  %v4003_v19 = vpop.f32.mrb[31].mxu1  ;;  %v4008_v53 = vpop.f32.mrb[23].mxu0  ;;  %v4115_v41 = vld [vmem:[%s4963_s8 + $0x18] sm:$0xff]   ;;  %v3794_v46 = vld [vmem:[%s4961_s6 + $0x1] ss:$0 sm:$0xff] }
 0xedb   : > { %v4117_v19 = vld [vmem:[%s4964_s9 + $0x28] sm:$0xff]   ;;  %v4118_v53 = vld [vmem:[%s4964_s9 + $0x30] sm:$0xff]  }
 0xedc   : > { %v3178_v20 = vrot.slane %v3170_v47, %v4411_v31  ;;  %v3185_v54 = vrot.slane %v3171_v48, %v4411_v31  ;;  %v3194_v55 = vrot.slane %v3186_v49, %v4411_v31  ;;  %v3201_v57 = vrot.slane %v3187_v50, %v4411_v31  ;;  %v4116_v50 = vld [vmem:[%s4964_s9 + $0x20] sm:$0xff]  }
 0xede   : > { %v3202_v58 = vcombine.low %v3178_v20, %v3194_v55  ;;  %v3203_v59 = vcombine.high %v3178_v20, %v3194_v55  ;;  %v3218_v60 = vcombine.low %v3185_v54, %v3201_v57  ;;  %v3219_v61 = vcombine.high %v3185_v54, %v3201_v57  ;;  %v4119_v20 = vld [vmem:[%s4964_s9 + $0x38] sm:$0xff]  }
 0xee0   : > { %v3210_v1 = vrot.slane %v3202_v58, %v4421_v40  ;;  %v3217_v39 = vrot.slane %v3203_v59, %v4421_v40  ;;  %v3226_v0 = vrot.slane %v3218_v60, %v4421_v40  ;;  %v3233_v2 = vrot.slane %v3219_v61, %v4421_v40 }
 0xee2   : > { %v3238_v3 = vcombine.low %v3210_v1, %v3217_v39  ;;  %v3773_v5 = vcombine.high %v3210_v1, %v3217_v39  ;;  %v3254_v7 = vcombine.low %v3226_v0, %v3233_v2  ;;  %v3774_v8 = vcombine.high %v3226_v0, %v3233_v2 }
 0xee4   : > { %v3245_v10 = vrot.slane %v3238_v3, %v4411_v31  ;;  %v3253_v11 = vrot.slane %v3773_v5, %v4411_v31  ;;  %v3261_v12 = vrot.slane %v3254_v7, %v4411_v31  ;;  %v3269_v13 = vrot.slane %v3774_v8, %v4411_v31 }
 0xee6   : > { %v3271_v15 = vcombine.high %v3245_v10, %v3253_v11  ;;  %v3287_v16 = vcombine.high %v3261_v12, %v3269_v13  ;;  %v3270_v21 = vcombine.low %v3245_v10, %v3253_v11  ;;  %v3286_v22 = vcombine.low %v3261_v12, %v3269_v13 }
 0xee8   : > { %v3285_v23 = vrot.slane %v3271_v15, %v4421_v40  ;;  %v3301_v24 = vrot.slane %v3287_v16, %v4421_v40  ;;  %v3278_v25 = vrot.slane %v3270_v21, %v4421_v40  ;;  %v3294_v26 = vrot.slane %v3286_v22, %v4421_v40 }
 0xeea   : > { %v3304_v27 = vcombine.low %v3285_v23, %v3301_v24  ;;  %v3303_v51 = vcombine.high %v3278_v25, %v3294_v26  ;;  %v3305_v56 = vcombine.high %v3285_v23, %v3301_v24  ;;  %v3302_v28 = vcombine.low %v3278_v25, %v3294_v26 }
 0xeec   : > { %3311 = vrot.lane.b32.xlu0 %v3304_v27, %s4982_s25  ;;  %3307 = vrot.lane.b32.xlu1 %v3303_v51, %s4983_s30  ;;  %s386_s30 = sand.u32 1, %s4220_s18   ;;  %v3806_v27 = vld [vmem:[%s4965_s10] ss:$0 sm:$0xff]  ;;  %s4912_s25 = scalar_lea.hbm %s4966_s11, %s3808_s12 }
 0xeed   : > { %s3616_s0 = scalar_lea.sflag [#allocation3], %s386_s30 }
 0xef0   : > { %3315 = vrot.lane.b32.xlu1 %v3305_v56, %s4984_s29  ;;  %s3701_s29 = sshll.u32 %s386_s30, 3 }
 0xef1   : > { %s388_s13 = scalar_lea.vmem [#allocation2], %s3701_s29  ;;  %s4170_s29 = sshll.u32 %s4242_s21, 4  ;;  %s4171_s29 = int_to_ptr.vmem [resolvable:$false] %s4170_s29 }
 0xef2   : > { %s3629_s22 = sshll.u32 %s388_s13, 4  ;;  %s4172_s15 = scalar_lea.vmem %s4171_s29, 256  ;;  %s4914_s22 = int_to_ptr.vmem [resolvable:$true] %s3629_s22 }
 0xef3   : > { %s4166_s14 = scalar_lea.vmem %s4914_s22, 128  ;;  %p4173_p0 = scmp.lt.s32.totalorder %s4914_s22, %s4171_s29 }
 0xef4   : > { %p4167_p11 = scmp.ne.s32.totalorder %s4914_s22, %s4166_s14  ;;  %p4174_p1 = scmp.lt.s32.totalorder %s4172_s15, %s4166_s14 }
 0xef6   : > { %p4168_p12 = pnand %p4167_p11, %p4341_p5  ;;  %p4175_p2 = por %p4174_p1, %p4173_p0 }
 0xef8   : > { %p4169_p13 = pneg %p4168_p12 }
 0xefa   : > { %p4176_p3 = pnand %p4175_p2, %p4169_p13 }
 0xf5e   : > { %v3308_v31 = vpop.permute.xlu1 %3307  ;;  %v3312_v18 = vpop.permute.xlu0 %3311 }
 0xf5f   : > { %v3318_v14 = vsel %vm925_vm2, %v3302_v28, %v3308_v31 }
 0xf60   : > { %v3319_v6 = vsel %vm1725_vm3, %v3318_v14, %v3312_v18 }
 0xf62   : > { %v3316_v62 = vpop.permute.xlu1 %3315 }
 0xf63   : > { %v3320_v32 = vsel %vm1727_vm4, %v3319_v6, %v3316_v62 }
 0xf64   : > { %v3321_v40 = vpack.c.bf16 %v3320_v32, %v3320_v32 }
 0xf66   : > { %4014 = vmatmul.mubr.msk.bf16.vlgmr.msra.gmra.mrb[32].mxu1 %vm413_vm0, %v3321_v40 }
 0xf67   : > { %4029 = vmatprep.mubr.msk.bf16.mxu1 %vm4231_vm1, %v4230_v4  ;;  %4026 = vmatpush3.bf16.msra.mxu1 %v4113_v42 }
 0xf68   : > { %4027 = vmatprep.subr.bf16.mxu1 %v4230_v4 }
 0xf6b   : > { %4028 = vmatpush3.bf16.msra.mxu1 %v4115_v41 }
0x1039   : > { %v3371_v34 = vpop.f32.mrb[32].mxu1 }
0x103a   : > { %v4858_v36 = vadd.f32 %v3371_v34, %v4650_v17  ;;  %v4015_v37 = vpop.f32.mrb[33].mxu1  ;;  %v4114_v17 = vld [vmem:[%s4962_s7 + $0x18] sm:$0xff]  }
0x103b   : > { %v3374_v29 = vpop.f32.mrb[34].mxu1  ;;  %4020 = vmatpush3.bf16.msra.mxu0 %v4114_v17 }
0x103c   : > { %v4016_v52 = vpop.f32.mrb[35].mxu1  ;;  %v3398_v33 = vmul.f32 %v4858_v36, %v4858_v36  ;;  %4033 = vmatprep.subr.bf16.mxu0 %v4230_v4 }
0x103e   : > { %v3399_v35 = vsel %vm413_vm0, %v3398_v33, 0.0 }
0x103f   : > { %3400 = vadd.xlane.f32.xlu0 %v3399_v35 }
0x10cc   : > { %v3401_v43 = vpop.xlane.xlu0 %3400 }
0x10cd   : > { %v3402_v30 = vmul.f32 0.03125, %v3401_v43 }
0x10cf   : > { %v3403_v44 = vadd.f32 1e-06, %v3402_v30 }
0x10d1   : > { %4160 = vrsqrt.f32 %v3403_v44 }
0x10db   : > { %v4161_v45 = vpop.eup %4160 }
0x10dc   : > { %v3405_v47 = vmul.f32 %v4161_v45, %v4858_v36 }
0x10de   : > { %v3410_v48 = vmul.f32 %v3794_v46, %v3405_v47 }
0x10e0   : > { %v3411_v49 = vpack.c.bf16 %v3410_v48, %v3410_v48 }
0x10e2   : > { %4022 = vmatmul.mubr.msk.bf16.vlgmr.msra.gmra.mrb[24].mxu0 %vm413_vm0, %v3411_v49  ;;  %4030 = vmatmul.mubr.msk.bf16.vlgmr.msra.gmra.mrb[36].mxu1 %vm413_vm0, %v3411_v49 }
0x10e3   : > { %4041 = vmatprep.mubr.msk.bf16.mxu0 %vm4231_vm1, %v4230_v4  ;;  %4034 = vmatpush3.bf16.msra.mxu0 %v4116_v50 }
0x10e4   : > { %4035 = vmatprep.subr.bf16.mxu0 %v4230_v4 }
0x10e7   : > { %4036 = vmatpush3.bf16.msra.mxu0 %v4117_v19 }
0x10e8   : > { %4037 = vmatprep.subr.bf16.mxu0 %v4230_v4 }
0x10eb   : > { %4038 = vmatpush3.bf16.msra.mxu0 %v4118_v53 }
0x10ec   : > { %4039 = vmatprep.subr.bf16.mxu0 %v4230_v4 }
0x10ef   : > { %4040 = vmatpush3.bf16.msra.mxu0 %v4119_v20 }
0x11b5   : > { %v3461_v54 = vpop.f32.mrb[24].mxu0  ;;  %v3522_v55 = vpop.f32.mrb[36].mxu1 }
0x11b6   : > { %v3468_v57 = vmul.f32 0.044715, %v3461_v54  ;;  %v4023_v58 = vpop.f32.mrb[25].mxu0  ;;  %v4031_v59 = vpop.f32.mrb[37].mxu1  ;;  %v3467_v5 = vmul.f32 0.5, %v3461_v54 }
0x11b7   : > { %v3464_v60 = vpop.f32.mrb[26].mxu0  ;;  %v3525_v61 = vpop.f32.mrb[38].mxu1 }
0x11b8   : > { %v3469_v63 = vmul.f32 %v3468_v57, %v3461_v54  ;;  %v4024_v1 = vpop.f32.mrb[27].mxu0  ;;  %v4032_v39 = vpop.f32.mrb[39].mxu1 }
0x11ba   : > { %v3470_v0 = vmul.f32 %v3469_v63, %v3461_v54 }
0x11bc   : > { %v3471_v2 = vadd.f32 %v3470_v0, %v3461_v54 }
0x11be   : > { %v3472_v3 = vmul.f32 0.7978846, %v3471_v2 }
0x11c0   : > { %4162 = vtanh.f32 %v3472_v3 }
0x11ca   : > { %v4163_v4 = vpop.eup %4162 }
0x11cb   : > { %v3474_v7 = vadd.f32 1.0, %v4163_v4 }
0x11cd   : > { %v3475_v8 = vmul.f32 %v3474_v7, %v3467_v5 }
0x11cf   : > { %v3528_v9 = vmul.f32 %v3522_v55, %v3475_v8 }
0x11d1   : > { %v3529_v10 = vpack.c.bf16 %v3528_v9, %v3528_v9 }
0x11d3   : > { %4042 = vmatmul.mubr.msk.bf16.vlgmr.msra.gmra.mrb[28].mxu0 %vm1959_vm5, %v3529_v10 }
0x12a6   : > { %v3591_v11 = vpop.f32.mrb[28].mxu0 }
0x12a7   : > { %v3597_v12 = vadd.f32 %v3591_v11, %v4858_v36  ;;  %v4043_v13 = vpop.f32.mrb[29].mxu0 }
0x12a8   : > { %v3594_v15 = vpop.f32.mrb[30].mxu0 }
0x12a9   : > { %v4044_v16 = vpop.f32.mrb[31].mxu0  ;;  %v3599_v21 = vmul.f32 %v3597_v12, %v3597_v12 }
0x12ab   : > { %v3600_v22 = vsel %vm413_vm0, %v3599_v21, 0.0 }
0x12ac   : > { %3601 = vadd.xlane.f32.xlu1 %v3600_v22 }
0x1339   : > { %v3602_v23 = vpop.xlane.xlu1 %3601 }
0x133a   : > { %v3603_v24 = vmul.f32 0.03125, %v3602_v23 }
0x133c   : > { %v3604_v25 = vadd.f32 1e-06, %v3603_v24 }
0x133e   : > { %4164 = vrsqrt.f32 %v3604_v25 }
0x1348   : > { %v4165_v26 = vpop.eup %4164 }
0x1349   : > { %v3606_v51 = vmul.f32 %v4165_v26, %v3597_v12 }
0x134b   : > { %v3613_v56 = vmul.f32 %v3806_v27, %v3606_v51 }
0x134d   : > { %3614 = vst.msk [vmem:[%s388_s13] sm:$0xff] %vm413_vm0, %v3613_v56 }
0x134e   : > { %4179 = shalt.err (!%p4176_p3)
}
0x134f   : > { %s4180_s30 = scalar_lea.hbm %s4912_s25, 128  ;;  %s4184_s16 = scalar_lea.hbm %s4966_s11, 256 }
0x1350   : > { %p4181_p4 = scmp.ne.s32.totalorder %s4912_s25, %s4180_s30  ;;  %p4185_p9 = scmp.lt.u32.totalorder %s4912_s25, %s4966_s11 }
0x1351   : > { %p4186_p10 = scmp.lt.u32.totalorder %s4184_s16, %s4180_s30  ;;  %p4188_p12 = scmp.lt.u32.totalorder %s4180_s30, %s4912_s25 }
0x1352   : > { %p4182_p7 = pnand %p4181_p4, %p4341_p5 }
0x1353   : > { %p4187_p11 = por %p4186_p10, %p4185_p9 }
0x1354   : > { %p4183_p8 = pneg %p4182_p7 }
0x1355   : > { %p4189_p13 = por %p4188_p12, %p4187_p11 }
0x1357   : > { %p4190_p0 = pnand %p4189_p13, %p4183_p8 }
0x1359   : > { %4193 = shalt.err (!%p4190_p0)
}
0x135a   : > { %4045 = dma.vmem_to_hbm [thread:$0]  (%p4341_p5), %s4914_s22, 128, %s4912_s25, %s3616_s0  }
0x135b PF: > { %p4051_p1 = scmp.ge.s32.totalorder %s4228_s20, 2  ;;  %s3641_s14 = sand.u32 1, %s4216_s17  }
0x135c   : > { %s3642_s29 = scalar_lea.sflag [#allocation3], %s3641_s14 }
0x135d   : > { %p4048_p2 = pnand %p4051_p1, %p4345_p6 }
0x135f   : > { %4211 = dma.done.wait (!%p4048_p2), %s3642_s29, 128  }
0x1360   : > { %4213 = vsyncadd (!%p4048_p2), %s3642_s29, 4294967168  ;;  %p21_p3 = scmp.ge.s32.totalorder %s4328_s23, 4   ;;  %s4985_s17 = smov %s4220_s18 }
0x1361   : > { %s4986_s18 = smov %s4224_s19  ;;  %s4987_s19 = smov %s4339_s26 }
0x1362   : > { %s4988_s20 = smov %s4328_s23  ;;  %23 = sbr.rel (!%p21_p3) target bundleno = 5 (0x5), region = 107 }
0x1369   :  { %3647 = vsyncpa [#allocation3], 1 }
0x136a   :  { %3649 = vsyncpa [#allocation3 + $0x1], 1 }

</bundles_post_ra>
